<compile_context>
chip_gen: v7x
topology: tpu7x:2x2x1
jax: 0.10.0
libtpu: 0.0.40
codegen_flags: <defaults>
</compile_context>

<pallas_src>
import jax
import jax.numpy as jnp
from jax.experimental import pallas as pl
from jax.experimental.pallas import tpu as pltpu


def conv2d_vpu_kernel(w_ref, b_ref, x_ref, o_ref):
    """3x3 valid conv for one image, VPU-only shift-and-add.

    w_ref: (Cout*Cin*KH*KW,) f32 in SMEM (OIHW flattened)
    b_ref: (Cout,)           f32 in SMEM
    x_ref: (1, Cin, H, W)    f32 in VMEM
    o_ref: (1, Cout, Ho, Wo) f32 in VMEM
    """
    _, Cin, H, W = x_ref.shape
    _, Cout, Ho, Wo = o_ref.shape
    KH = H - Ho + 1
    KW = W - Wo + 1

    # Accumulators initialized with the bias (bias fold — no VMEM bias operand).
    accs = [jnp.full((Ho, Wo), b_ref[co], dtype=jnp.float32) for co in range(Cout)]

    for ci in range(Cin):
        xp = x_ref[0, ci, :, :]                      # (H, W) plane, loaded once
        for kh in range(KH):
            for kw in range(KW):
                xs = xp[kh:kh + Ho, kw:kw + Wo]      # shifted window, sliced once
                for co in range(Cout):
                    w = w_ref[((co * Cin + ci) * KH + kh) * KW + kw]  # SMEM scalar
                    accs[co] = accs[co] + w * xs     # scalar x vector FMA (VPU)

    for co in range(Cout):
        o_ref[0, co, :, :] = accs[co]


def conv2d_pallas(x_nchw, w_oihw, bias):
    """torch.nn.Conv2d(3, 3, 3) semantics (stride=1, padding=0), NCHW in/out."""
    N, Cin, H, W = x_nchw.shape
    Cout, _, KH, KW = w_oihw.shape
    Ho = H - KH + 1
    Wo = W - KW + 1

    w_flat = w_oihw.reshape(-1).astype(jnp.float32)   # (Cout*Cin*KH*KW,) -> SMEM
    b_vec = bias.astype(jnp.float32)                  # (Cout,)           -> SMEM
    x_f32 = x_nchw.astype(jnp.float32)                # no layout change (NCHW kept)

    out = pl.pallas_call(
        conv2d_vpu_kernel,
        out_shape=jax.ShapeDtypeStruct((N, Cout, Ho, Wo), jnp.float32),
        grid=(N,),
        in_specs=[
            pl.BlockSpec(memory_space=pltpu.MemorySpace.SMEM),   # weights (scalars)
            pl.BlockSpec(memory_space=pltpu.MemorySpace.SMEM),   # bias (scalars)
            pl.BlockSpec((1, Cin, H, W), lambda n: (n, 0, 0, 0)),
        ],
        out_specs=pl.BlockSpec((1, Cout, Ho, Wo), lambda n: (n, 0, 0, 0)),
        compiler_params=pltpu.CompilerParams(
            dimension_semantics=("parallel",)),
    )(w_flat, b_vec, x_f32)

    return out  # already (N, Cout, Ho, Wo) — PyTorch NCHW convention


def init_params(key):
    """Deterministic init matching nn.Conv2d(3, 3, 3) parameter shapes."""
    Cout, Cin, KH, KW = 3, 3, 3, 3
    fan_in = Cin * KH * KW
    bound = 1.0 / jnp.sqrt(jnp.float32(fan_in))
    kw_key, kb_key = jax.random.split(key)
    weight = jax.random.uniform(kw_key, (Cout, Cin, KH, KW), jnp.float32,
                                minval=-bound, maxval=bound)
    bias = jax.random.uniform(kb_key, (Cout,), jnp.float32,
                              minval=-bound, maxval=bound)
    return weight, bias


if __name__ == "__main__":
    key = jax.random.PRNGKey(0)
    k_x, k_p = jax.random.split(key)

    # Small NCHW input consistent with Conv2d(in_channels=3, ...).
    x = jax.random.normal(k_x, (2, 3, 16, 16), jnp.float32)
    weight, bias = init_params(k_p)

    out = conv2d_pallas(x, weight, bias)
    out = jax.block_until_ready(out)

    # Sanity check against XLA's conv (same semantics as torch.nn.Conv2d).
    ref = jax.lax.conv_general_dilated(
        x, weight, window_strides=(1, 1), padding="VALID",
        dimension_numbers=("NCHW", "OIHW", "NCHW"),
    ) + bias.reshape(1, -1, 1, 1)
    ref = jax.block_until_ready(ref)

    assert out.shape == (2, 3, 14, 14), out.shape
    assert jnp.allclose(out, ref, atol=1e-4, rtol=1e-4), "mismatch vs reference conv"

    print("KERNEL_OK")
</pallas_src>

<mosaic_0001>
module attributes {stable_mosaic.version = 11 : i64} {
  func.func @conv2d_vpu_kernel(%arg0: i32, %arg1: memref<81xf32, #tpu.memory_space<smem>>, %arg2: memref<3xf32, #tpu.memory_space<smem>>, %arg3: memref<1x3x16x16xf32, #tpu.memory_space<vmem>>, %arg4: memref<1x3x14x14xf32, #tpu.memory_space<vmem>>) attributes {dimension_semantics = [#tpu.dimension_semantics<parallel>], iteration_bounds = array<i64: 2>, scalar_prefetch = 0 : i64, scratch_operands = 0 : i64, tpu.core_type = #tpu.core_type<tc>, window_params = [{transform_indices = @transform_0, window_bounds = array<i64: 81>}, {transform_indices = @transform_1, window_bounds = array<i64: 3>}, {transform_indices = @transform_2, window_bounds = array<i64: 1, 3, 16, 16>}, {transform_indices = @transform_3, window_bounds = array<i64: 1, 3, 14, 14>}]} {
    %c0 = arith.constant 0 : index
    %0 = memref.load %arg2[%c0] : memref<3xf32, #tpu.memory_space<smem>>
    %1 = vector.broadcast %0 : f32 to vector<14x14xf32>
    %c1 = arith.constant 1 : index
    %2 = memref.load %arg2[%c1] : memref<3xf32, #tpu.memory_space<smem>>
    %3 = vector.broadcast %2 : f32 to vector<14x14xf32>
    %c2 = arith.constant 2 : index
    %4 = memref.load %arg2[%c2] : memref<3xf32, #tpu.memory_space<smem>>
    %5 = vector.broadcast %4 : f32 to vector<14x14xf32>
    %c0_0 = arith.constant 0 : index
    %c0_1 = arith.constant 0 : index
    %c0_2 = arith.constant 0 : index
    %c0_3 = arith.constant 0 : index
    %6 = vector.load %arg3[%c0_0, %c0_1, %c0_2, %c0_3] : memref<1x3x16x16xf32, #tpu.memory_space<vmem>>, vector<1x1x16x16xf32>
    %7 = vector.shape_cast %6 : vector<1x1x16x16xf32> to vector<16x16xf32>
    %8 = vector.extract_strided_slice %7 {offsets = [0, 0], sizes = [14, 14], strides = [1, 1]} : vector<16x16xf32> to vector<14x14xf32>
    %c0_4 = arith.constant 0 : index
    %9 = memref.load %arg1[%c0_4] : memref<81xf32, #tpu.memory_space<smem>>
    %10 = vector.broadcast %9 : f32 to vector<14x14xf32>
    %11 = arith.mulf %10, %8 : vector<14x14xf32>
    %12 = arith.addf %1, %11 : vector<14x14xf32>
    %c27 = arith.constant 27 : index
    %13 = memref.load %arg1[%c27] : memref<81xf32, #tpu.memory_space<smem>>
    %14 = vector.broadcast %13 : f32 to vector<14x14xf32>
    %15 = arith.mulf %14, %8 : vector<14x14xf32>
    %16 = arith.addf %3, %15 : vector<14x14xf32>
    %c54 = arith.constant 54 : index
    %17 = memref.load %arg1[%c54] : memref<81xf32, #tpu.memory_space<smem>>
    %18 = vector.broadcast %17 : f32 to vector<14x14xf32>
    %19 = arith.mulf %18, %8 : vector<14x14xf32>
    %20 = arith.addf %5, %19 : vector<14x14xf32>
    %21 = vector.extract_strided_slice %7 {offsets = [0, 1], sizes = [14, 14], strides = [1, 1]} : vector<16x16xf32> to vector<14x14xf32>
    %c1_5 = arith.constant 1 : index
    %22 = memref.load %arg1[%c1_5] : memref<81xf32, #tpu.memory_space<smem>>
    %23 = vector.broadcast %22 : f32 to vector<14x14xf32>
    %24 = arith.mulf %23, %21 : vector<14x14xf32>
    %25 = arith.addf %12, %24 : vector<14x14xf32>
    %c28 = arith.constant 28 : index
    %26 = memref.load %arg1[%c28] : memref<81xf32, #tpu.memory_space<smem>>
    %27 = vector.broadcast %26 : f32 to vector<14x14xf32>
    %28 = arith.mulf %27, %21 : vector<14x14xf32>
    %29 = arith.addf %16, %28 : vector<14x14xf32>
    %c55 = arith.constant 55 : index
    %30 = memref.load %arg1[%c55] : memref<81xf32, #tpu.memory_space<smem>>
    %31 = vector.broadcast %30 : f32 to vector<14x14xf32>
    %32 = arith.mulf %31, %21 : vector<14x14xf32>
    %33 = arith.addf %20, %32 : vector<14x14xf32>
    %34 = vector.extract_strided_slice %7 {offsets = [0, 2], sizes = [14, 14], strides = [1, 1]} : vector<16x16xf32> to vector<14x14xf32>
    %c2_6 = arith.constant 2 : index
    %35 = memref.load %arg1[%c2_6] : memref<81xf32, #tpu.memory_space<smem>>
    %36 = vector.broadcast %35 : f32 to vector<14x14xf32>
    %37 = arith.mulf %36, %34 : vector<14x14xf32>
    %38 = arith.addf %25, %37 : vector<14x14xf32>
    %c29 = arith.constant 29 : index
    %39 = memref.load %arg1[%c29] : memref<81xf32, #tpu.memory_space<smem>>
    %40 = vector.broadcast %39 : f32 to vector<14x14xf32>
    %41 = arith.mulf %40, %34 : vector<14x14xf32>
    %42 = arith.addf %29, %41 : vector<14x14xf32>
    %c56 = arith.constant 56 : index
    %43 = memref.load %arg1[%c56] : memref<81xf32, #tpu.memory_space<smem>>
    %44 = vector.broadcast %43 : f32 to vector<14x14xf32>
    %45 = arith.mulf %44, %34 : vector<14x14xf32>
    %46 = arith.addf %33, %45 : vector<14x14xf32>
    %47 = vector.extract_strided_slice %7 {offsets = [1, 0], sizes = [14, 14], strides = [1, 1]} : vector<16x16xf32> to vector<14x14xf32>
    %c3 = arith.constant 3 : index
    %48 = memref.load %arg1[%c3] : memref<81xf32, #tpu.memory_space<smem>>
    %49 = vector.broadcast %48 : f32 to vector<14x14xf32>
    %50 = arith.mulf %49, %47 : vector<14x14xf32>
    %51 = arith.addf %38, %50 : vector<14x14xf32>
    %c30 = arith.constant 30 : index
    %52 = memref.load %arg1[%c30] : memref<81xf32, #tpu.memory_space<smem>>
    %53 = vector.broadcast %52 : f32 to vector<14x14xf32>
    %54 = arith.mulf %53, %47 : vector<14x14xf32>
    %55 = arith.addf %42, %54 : vector<14x14xf32>
    %c57 = arith.constant 57 : index
    %56 = memref.load %arg1[%c57] : memref<81xf32, #tpu.memory_space<smem>>
    %57 = vector.broadcast %56 : f32 to vector<14x14xf32>
    %58 = arith.mulf %57, %47 : vector<14x14xf32>
    %59 = arith.addf %46, %58 : vector<14x14xf32>
    %60 = vector.extract_strided_slice %7 {offsets = [1, 1], sizes = [14, 14], strides = [1, 1]} : vector<16x16xf32> to vector<14x14xf32>
    %c4 = arith.constant 4 : index
    %61 = memref.load %arg1[%c4] : memref<81xf32, #tpu.memory_space<smem>>
    %62 = vector.broadcast %61 : f32 to vector<14x14xf32>
    %63 = arith.mulf %62, %60 : vector<14x14xf32>
    %64 = arith.addf %51, %63 : vector<14x14xf32>
    %c31 = arith.constant 31 : index
    %65 = memref.load %arg1[%c31] : memref<81xf32, #tpu.memory_space<smem>>
    %66 = vector.broadcast %65 : f32 to vector<14x14xf32>
    %67 = arith.mulf %66, %60 : vector<14x14xf32>
    %68 = arith.addf %55, %67 : vector<14x14xf32>
    %c58 = arith.constant 58 : index
    %69 = memref.load %arg1[%c58] : memref<81xf32, #tpu.memory_space<smem>>
    %70 = vector.broadcast %69 : f32 to vector<14x14xf32>
    %71 = arith.mulf %70, %60 : vector<14x14xf32>
    %72 = arith.addf %59, %71 : vector<14x14xf32>
    %73 = vector.extract_strided_slice %7 {offsets = [1, 2], sizes = [14, 14], strides = [1, 1]} : vector<16x16xf32> to vector<14x14xf32>
    %c5 = arith.constant 5 : index
    %74 = memref.load %arg1[%c5] : memref<81xf32, #tpu.memory_space<smem>>
    %75 = vector.broadcast %74 : f32 to vector<14x14xf32>
    %76 = arith.mulf %75, %73 : vector<14x14xf32>
    %77 = arith.addf %64, %76 : vector<14x14xf32>
    %c32 = arith.constant 32 : index
    %78 = memref.load %arg1[%c32] : memref<81xf32, #tpu.memory_space<smem>>
    %79 = vector.broadcast %78 : f32 to vector<14x14xf32>
    %80 = arith.mulf %79, %73 : vector<14x14xf32>
    %81 = arith.addf %68, %80 : vector<14x14xf32>
    %c59 = arith.constant 59 : index
    %82 = memref.load %arg1[%c59] : memref<81xf32, #tpu.memory_space<smem>>
    %83 = vector.broadcast %82 : f32 to vector<14x14xf32>
    %84 = arith.mulf %83, %73 : vector<14x14xf32>
    %85 = arith.addf %72, %84 : vector<14x14xf32>
    %86 = vector.extract_strided_slice %7 {offsets = [2, 0], sizes = [14, 14], strides = [1, 1]} : vector<16x16xf32> to vector<14x14xf32>
    %c6 = arith.constant 6 : index
    %87 = memref.load %arg1[%c6] : memref<81xf32, #tpu.memory_space<smem>>
    %88 = vector.broadcast %87 : f32 to vector<14x14xf32>
    %89 = arith.mulf %88, %86 : vector<14x14xf32>
    %90 = arith.addf %77, %89 : vector<14x14xf32>
    %c33 = arith.constant 33 : index
    %91 = memref.load %arg1[%c33] : memref<81xf32, #tpu.memory_space<smem>>
    %92 = vector.broadcast %91 : f32 to vector<14x14xf32>
    %93 = arith.mulf %92, %86 : vector<14x14xf32>
    %94 = arith.addf %81, %93 : vector<14x14xf32>
    %c60 = arith.constant 60 : index
    %95 = memref.load %arg1[%c60] : memref<81xf32, #tpu.memory_space<smem>>
    %96 = vector.broadcast %95 : f32 to vector<14x14xf32>
    %97 = arith.mulf %96, %86 : vector<14x14xf32>
    %98 = arith.addf %85, %97 : vector<14x14xf32>
    %99 = vector.extract_strided_slice %7 {offsets = [2, 1], sizes = [14, 14], strides = [1, 1]} : vector<16x16xf32> to vector<14x14xf32>
    %c7 = arith.constant 7 : index
    %100 = memref.load %arg1[%c7] : memref<81xf32, #tpu.memory_space<smem>>
    %101 = vector.broadcast %100 : f32 to vector<14x14xf32>
    %102 = arith.mulf %101, %99 : vector<14x14xf32>
    %103 = arith.addf %90, %102 : vector<14x14xf32>
    %c34 = arith.constant 34 : index
    %104 = memref.load %arg1[%c34] : memref<81xf32, #tpu.memory_space<smem>>
    %105 = vector.broadcast %104 : f32 to vector<14x14xf32>
    %106 = arith.mulf %105, %99 : vector<14x14xf32>
    %107 = arith.addf %94, %106 : vector<14x14xf32>
    %c61 = arith.constant 61 : index
    %108 = memref.load %arg1[%c61] : memref<81xf32, #tpu.memory_space<smem>>
    %109 = vector.broadcast %108 : f32 to vector<14x14xf32>
    %110 = arith.mulf %109, %99 : vector<14x14xf32>
    %111 = arith.addf %98, %110 : vector<14x14xf32>
    %112 = vector.extract_strided_slice %7 {offsets = [2, 2], sizes = [14, 14], strides = [1, 1]} : vector<16x16xf32> to vector<14x14xf32>
    %c8 = arith.constant 8 : index
    %113 = memref.load %arg1[%c8] : memref<81xf32, #tpu.memory_space<smem>>
    %114 = vector.broadcast %113 : f32 to vector<14x14xf32>
    %115 = arith.mulf %114, %112 : vector<14x14xf32>
    %116 = arith.addf %103, %115 : vector<14x14xf32>
    %c35 = arith.constant 35 : index
    %117 = memref.load %arg1[%c35] : memref<81xf32, #tpu.memory_space<smem>>
    %118 = vector.broadcast %117 : f32 to vector<14x14xf32>
    %119 = arith.mulf %118, %112 : vector<14x14xf32>
    %120 = arith.addf %107, %119 : vector<14x14xf32>
    %c62 = arith.constant 62 : index
    %121 = memref.load %arg1[%c62] : memref<81xf32, #tpu.memory_space<smem>>
    %122 = vector.broadcast %121 : f32 to vector<14x14xf32>
    %123 = arith.mulf %122, %112 : vector<14x14xf32>
    %124 = arith.addf %111, %123 : vector<14x14xf32>
    %c0_7 = arith.constant 0 : index
    %c1_8 = arith.constant 1 : index
    %c0_9 = arith.constant 0 : index
    %c0_10 = arith.constant 0 : index
    %125 = vector.load %arg3[%c0_7, %c1_8, %c0_9, %c0_10] : memref<1x3x16x16xf32, #tpu.memory_space<vmem>>, vector<1x1x16x16xf32>
    %126 = vector.shape_cast %125 : vector<1x1x16x16xf32> to vector<16x16xf32>
    %127 = vector.extract_strided_slice %126 {offsets = [0, 0], sizes = [14, 14], strides = [1, 1]} : vector<16x16xf32> to vector<14x14xf32>
    %c9 = arith.constant 9 : index
    %128 = memref.load %arg1[%c9] : memref<81xf32, #tpu.memory_space<smem>>
    %129 = vector.broadcast %128 : f32 to vector<14x14xf32>
    %130 = arith.mulf %129, %127 : vector<14x14xf32>
    %131 = arith.addf %116, %130 : vector<14x14xf32>
    %c36 = arith.constant 36 : index
    %132 = memref.load %arg1[%c36] : memref<81xf32, #tpu.memory_space<smem>>
    %133 = vector.broadcast %132 : f32 to vector<14x14xf32>
    %134 = arith.mulf %133, %127 : vector<14x14xf32>
    %135 = arith.addf %120, %134 : vector<14x14xf32>
    %c63 = arith.constant 63 : index
    %136 = memref.load %arg1[%c63] : memref<81xf32, #tpu.memory_space<smem>>
    %137 = vector.broadcast %136 : f32 to vector<14x14xf32>
    %138 = arith.mulf %137, %127 : vector<14x14xf32>
    %139 = arith.addf %124, %138 : vector<14x14xf32>
    %140 = vector.extract_strided_slice %126 {offsets = [0, 1], sizes = [14, 14], strides = [1, 1]} : vector<16x16xf32> to vector<14x14xf32>
    %c10 = arith.constant 10 : index
    %141 = memref.load %arg1[%c10] : memref<81xf32, #tpu.memory_space<smem>>
    %142 = vector.broadcast %141 : f32 to vector<14x14xf32>
    %143 = arith.mulf %142, %140 : vector<14x14xf32>
    %144 = arith.addf %131, %143 : vector<14x14xf32>
    %c37 = arith.constant 37 : index
    %145 = memref.load %arg1[%c37] : memref<81xf32, #tpu.memory_space<smem>>
    %146 = vector.broadcast %145 : f32 to vector<14x14xf32>
    %147 = arith.mulf %146, %140 : vector<14x14xf32>
    %148 = arith.addf %135, %147 : vector<14x14xf32>
    %c64 = arith.constant 64 : index
    %149 = memref.load %arg1[%c64] : memref<81xf32, #tpu.memory_space<smem>>
    %150 = vector.broadcast %149 : f32 to vector<14x14xf32>
    %151 = arith.mulf %150, %140 : vector<14x14xf32>
    %152 = arith.addf %139, %151 : vector<14x14xf32>
    %153 = vector.extract_strided_slice %126 {offsets = [0, 2], sizes = [14, 14], strides = [1, 1]} : vector<16x16xf32> to vector<14x14xf32>
    %c11 = arith.constant 11 : index
    %154 = memref.load %arg1[%c11] : memref<81xf32, #tpu.memory_space<smem>>
    %155 = vector.broadcast %154 : f32 to vector<14x14xf32>
    %156 = arith.mulf %155, %153 : vector<14x14xf32>
    %157 = arith.addf %144, %156 : vector<14x14xf32>
    %c38 = arith.constant 38 : index
    %158 = memref.load %arg1[%c38] : memref<81xf32, #tpu.memory_space<smem>>
    %159 = vector.broadcast %158 : f32 to vector<14x14xf32>
    %160 = arith.mulf %159, %153 : vector<14x14xf32>
    %161 = arith.addf %148, %160 : vector<14x14xf32>
    %c65 = arith.constant 65 : index
    %162 = memref.load %arg1[%c65] : memref<81xf32, #tpu.memory_space<smem>>
    %163 = vector.broadcast %162 : f32 to vector<14x14xf32>
    %164 = arith.mulf %163, %153 : vector<14x14xf32>
    %165 = arith.addf %152, %164 : vector<14x14xf32>
    %166 = vector.extract_strided_slice %126 {offsets = [1, 0], sizes = [14, 14], strides = [1, 1]} : vector<16x16xf32> to vector<14x14xf32>
    %c12 = arith.constant 12 : index
    %167 = memref.load %arg1[%c12] : memref<81xf32, #tpu.memory_space<smem>>
    %168 = vector.broadcast %167 : f32 to vector<14x14xf32>
    %169 = arith.mulf %168, %166 : vector<14x14xf32>
    %170 = arith.addf %157, %169 : vector<14x14xf32>
    %c39 = arith.constant 39 : index
    %171 = memref.load %arg1[%c39] : memref<81xf32, #tpu.memory_space<smem>>
    %172 = vector.broadcast %171 : f32 to vector<14x14xf32>
    %173 = arith.mulf %172, %166 : vector<14x14xf32>
    %174 = arith.addf %161, %173 : vector<14x14xf32>
    %c66 = arith.constant 66 : index
    %175 = memref.load %arg1[%c66] : memref<81xf32, #tpu.memory_space<smem>>
    %176 = vector.broadcast %175 : f32 to vector<14x14xf32>
    %177 = arith.mulf %176, %166 : vector<14x14xf32>
    %178 = arith.addf %165, %177 : vector<14x14xf32>
    %179 = vector.extract_strided_slice %126 {offsets = [1, 1], sizes = [14, 14], strides = [1, 1]} : vector<16x16xf32> to vector<14x14xf32>
    %c13 = arith.constant 13 : index
    %180 = memref.load %arg1[%c13] : memref<81xf32, #tpu.memory_space<smem>>
    %181 = vector.broadcast %180 : f32 to vector<14x14xf32>
    %182 = arith.mulf %181, %179 : vector<14x14xf32>
    %183 = arith.addf %170, %182 : vector<14x14xf32>
    %c40 = arith.constant 40 : index
    %184 = memref.load %arg1[%c40] : memref<81xf32, #tpu.memory_space<smem>>
    %185 = vector.broadcast %184 : f32 to vector<14x14xf32>
    %186 = arith.mulf %185, %179 : vector<14x14xf32>
    %187 = arith.addf %174, %186 : vector<14x14xf32>
    %c67 = arith.constant 67 : index
    %188 = memref.load %arg1[%c67] : memref<81xf32, #tpu.memory_space<smem>>
    %189 = vector.broadcast %188 : f32 to vector<14x14xf32>
    %190 = arith.mulf %189, %179 : vector<14x14xf32>
    %191 = arith.addf %178, %190 : vector<14x14xf32>
    %192 = vector.extract_strided_slice %126 {offsets = [1, 2], sizes = [14, 14], strides = [1, 1]} : vector<16x16xf32> to vector<14x14xf32>
    %c14 = arith.constant 14 : index
    %193 = memref.load %arg1[%c14] : memref<81xf32, #tpu.memory_space<smem>>
    %194 = vector.broadcast %193 : f32 to vector<14x14xf32>
    %195 = arith.mulf %194, %192 : vector<14x14xf32>
    %196 = arith.addf %183, %195 : vector<14x14xf32>
    %c41 = arith.constant 41 : index
    %197 = memref.load %arg1[%c41] : memref<81xf32, #tpu.memory_space<smem>>
    %198 = vector.broadcast %197 : f32 to vector<14x14xf32>
    %199 = arith.mulf %198, %192 : vector<14x14xf32>
    %200 = arith.addf %187, %199 : vector<14x14xf32>
    %c68 = arith.constant 68 : index
    %201 = memref.load %arg1[%c68] : memref<81xf32, #tpu.memory_space<smem>>
    %202 = vector.broadcast %201 : f32 to vector<14x14xf32>
    %203 = arith.mulf %202, %192 : vector<14x14xf32>
    %204 = arith.addf %191, %203 : vector<14x14xf32>
    %205 = vector.extract_strided_slice %126 {offsets = [2, 0], sizes = [14, 14], strides = [1, 1]} : vector<16x16xf32> to vector<14x14xf32>
    %c15 = arith.constant 15 : index
    %206 = memref.load %arg1[%c15] : memref<81xf32, #tpu.memory_space<smem>>
    %207 = vector.broadcast %206 : f32 to vector<14x14xf32>
    %208 = arith.mulf %207, %205 : vector<14x14xf32>
    %209 = arith.addf %196, %208 : vector<14x14xf32>
    %c42 = arith.constant 42 : index
    %210 = memref.load %arg1[%c42] : memref<81xf32, #tpu.memory_space<smem>>
    %211 = vector.broadcast %210 : f32 to vector<14x14xf32>
    %212 = arith.mulf %211, %205 : vector<14x14xf32>
    %213 = arith.addf %200, %212 : vector<14x14xf32>
    %c69 = arith.constant 69 : index
    %214 = memref.load %arg1[%c69] : memref<81xf32, #tpu.memory_space<smem>>
    %215 = vector.broadcast %214 : f32 to vector<14x14xf32>
    %216 = arith.mulf %215, %205 : vector<14x14xf32>
    %217 = arith.addf %204, %216 : vector<14x14xf32>
    %218 = vector.extract_strided_slice %126 {offsets = [2, 1], sizes = [14, 14], strides = [1, 1]} : vector<16x16xf32> to vector<14x14xf32>
    %c16 = arith.constant 16 : index
    %219 = memref.load %arg1[%c16] : memref<81xf32, #tpu.memory_space<smem>>
    %220 = vector.broadcast %219 : f32 to vector<14x14xf32>
    %221 = arith.mulf %220, %218 : vector<14x14xf32>
    %222 = arith.addf %209, %221 : vector<14x14xf32>
    %c43 = arith.constant 43 : index
    %223 = memref.load %arg1[%c43] : memref<81xf32, #tpu.memory_space<smem>>
    %224 = vector.broadcast %223 : f32 to vector<14x14xf32>
    %225 = arith.mulf %224, %218 : vector<14x14xf32>
    %226 = arith.addf %213, %225 : vector<14x14xf32>
    %c70 = arith.constant 70 : index
    %227 = memref.load %arg1[%c70] : memref<81xf32, #tpu.memory_space<smem>>
    %228 = vector.broadcast %227 : f32 to vector<14x14xf32>
    %229 = arith.mulf %228, %218 : vector<14x14xf32>
    %230 = arith.addf %217, %229 : vector<14x14xf32>
    %231 = vector.extract_strided_slice %126 {offsets = [2, 2], sizes = [14, 14], strides = [1, 1]} : vector<16x16xf32> to vector<14x14xf32>
    %c17 = arith.constant 17 : index
    %232 = memref.load %arg1[%c17] : memref<81xf32, #tpu.memory_space<smem>>
    %233 = vector.broadcast %232 : f32 to vector<14x14xf32>
    %234 = arith.mulf %233, %231 : vector<14x14xf32>
    %235 = arith.addf %222, %234 : vector<14x14xf32>
    %c44 = arith.constant 44 : index
    %236 = memref.load %arg1[%c44] : memref<81xf32, #tpu.memory_space<smem>>
    %237 = vector.broadcast %236 : f32 to vector<14x14xf32>
    %238 = arith.mulf %237, %231 : vector<14x14xf32>
    %239 = arith.addf %226, %238 : vector<14x14xf32>
    %c71 = arith.constant 71 : index
    %240 = memref.load %arg1[%c71] : memref<81xf32, #tpu.memory_space<smem>>
    %241 = vector.broadcast %240 : f32 to vector<14x14xf32>
    %242 = arith.mulf %241, %231 : vector<14x14xf32>
    %243 = arith.addf %230, %242 : vector<14x14xf32>
    %c0_11 = arith.constant 0 : index
    %c2_12 = arith.constant 2 : index
    %c0_13 = arith.constant 0 : index
    %c0_14 = arith.constant 0 : index
    %244 = vector.load %arg3[%c0_11, %c2_12, %c0_13, %c0_14] : memref<1x3x16x16xf32, #tpu.memory_space<vmem>>, vector<1x1x16x16xf32>
    %245 = vector.shape_cast %244 : vector<1x1x16x16xf32> to vector<16x16xf32>
    %246 = vector.extract_strided_slice %245 {offsets = [0, 0], sizes = [14, 14], strides = [1, 1]} : vector<16x16xf32> to vector<14x14xf32>
    %c18 = arith.constant 18 : index
    %247 = memref.load %arg1[%c18] : memref<81xf32, #tpu.memory_space<smem>>
    %248 = vector.broadcast %247 : f32 to vector<14x14xf32>
    %249 = arith.mulf %248, %246 : vector<14x14xf32>
    %250 = arith.addf %235, %249 : vector<14x14xf32>
    %c45 = arith.constant 45 : index
    %251 = memref.load %arg1[%c45] : memref<81xf32, #tpu.memory_space<smem>>
    %252 = vector.broadcast %251 : f32 to vector<14x14xf32>
    %253 = arith.mulf %252, %246 : vector<14x14xf32>
    %254 = arith.addf %239, %253 : vector<14x14xf32>
    %c72 = arith.constant 72 : index
    %255 = memref.load %arg1[%c72] : memref<81xf32, #tpu.memory_space<smem>>
    %256 = vector.broadcast %255 : f32 to vector<14x14xf32>
    %257 = arith.mulf %256, %246 : vector<14x14xf32>
    %258 = arith.addf %243, %257 : vector<14x14xf32>
    %259 = vector.extract_strided_slice %245 {offsets = [0, 1], sizes = [14, 14], strides = [1, 1]} : vector<16x16xf32> to vector<14x14xf32>
    %c19 = arith.constant 19 : index
    %260 = memref.load %arg1[%c19] : memref<81xf32, #tpu.memory_space<smem>>
    %261 = vector.broadcast %260 : f32 to vector<14x14xf32>
    %262 = arith.mulf %261, %259 : vector<14x14xf32>
    %263 = arith.addf %250, %262 : vector<14x14xf32>
    %c46 = arith.constant 46 : index
    %264 = memref.load %arg1[%c46] : memref<81xf32, #tpu.memory_space<smem>>
    %265 = vector.broadcast %264 : f32 to vector<14x14xf32>
    %266 = arith.mulf %265, %259 : vector<14x14xf32>
    %267 = arith.addf %254, %266 : vector<14x14xf32>
    %c73 = arith.constant 73 : index
    %268 = memref.load %arg1[%c73] : memref<81xf32, #tpu.memory_space<smem>>
    %269 = vector.broadcast %268 : f32 to vector<14x14xf32>
    %270 = arith.mulf %269, %259 : vector<14x14xf32>
    %271 = arith.addf %258, %270 : vector<14x14xf32>
    %272 = vector.extract_strided_slice %245 {offsets = [0, 2], sizes = [14, 14], strides = [1, 1]} : vector<16x16xf32> to vector<14x14xf32>
    %c20 = arith.constant 20 : index
    %273 = memref.load %arg1[%c20] : memref<81xf32, #tpu.memory_space<smem>>
    %274 = vector.broadcast %273 : f32 to vector<14x14xf32>
    %275 = arith.mulf %274, %272 : vector<14x14xf32>
    %276 = arith.addf %263, %275 : vector<14x14xf32>
    %c47 = arith.constant 47 : index
    %277 = memref.load %arg1[%c47] : memref<81xf32, #tpu.memory_space<smem>>
    %278 = vector.broadcast %277 : f32 to vector<14x14xf32>
    %279 = arith.mulf %278, %272 : vector<14x14xf32>
    %280 = arith.addf %267, %279 : vector<14x14xf32>
    %c74 = arith.constant 74 : index
    %281 = memref.load %arg1[%c74] : memref<81xf32, #tpu.memory_space<smem>>
    %282 = vector.broadcast %281 : f32 to vector<14x14xf32>
    %283 = arith.mulf %282, %272 : vector<14x14xf32>
    %284 = arith.addf %271, %283 : vector<14x14xf32>
    %285 = vector.extract_strided_slice %245 {offsets = [1, 0], sizes = [14, 14], strides = [1, 1]} : vector<16x16xf32> to vector<14x14xf32>
    %c21 = arith.constant 21 : index
    %286 = memref.load %arg1[%c21] : memref<81xf32, #tpu.memory_space<smem>>
    %287 = vector.broadcast %286 : f32 to vector<14x14xf32>
    %288 = arith.mulf %287, %285 : vector<14x14xf32>
    %289 = arith.addf %276, %288 : vector<14x14xf32>
    %c48 = arith.constant 48 : index
    %290 = memref.load %arg1[%c48] : memref<81xf32, #tpu.memory_space<smem>>
    %291 = vector.broadcast %290 : f32 to vector<14x14xf32>
    %292 = arith.mulf %291, %285 : vector<14x14xf32>
    %293 = arith.addf %280, %292 : vector<14x14xf32>
    %c75 = arith.constant 75 : index
    %294 = memref.load %arg1[%c75] : memref<81xf32, #tpu.memory_space<smem>>
    %295 = vector.broadcast %294 : f32 to vector<14x14xf32>
    %296 = arith.mulf %295, %285 : vector<14x14xf32>
    %297 = arith.addf %284, %296 : vector<14x14xf32>
    %298 = vector.extract_strided_slice %245 {offsets = [1, 1], sizes = [14, 14], strides = [1, 1]} : vector<16x16xf32> to vector<14x14xf32>
    %c22 = arith.constant 22 : index
    %299 = memref.load %arg1[%c22] : memref<81xf32, #tpu.memory_space<smem>>
    %300 = vector.broadcast %299 : f32 to vector<14x14xf32>
    %301 = arith.mulf %300, %298 : vector<14x14xf32>
    %302 = arith.addf %289, %301 : vector<14x14xf32>
    %c49 = arith.constant 49 : index
    %303 = memref.load %arg1[%c49] : memref<81xf32, #tpu.memory_space<smem>>
    %304 = vector.broadcast %303 : f32 to vector<14x14xf32>
    %305 = arith.mulf %304, %298 : vector<14x14xf32>
    %306 = arith.addf %293, %305 : vector<14x14xf32>
    %c76 = arith.constant 76 : index
    %307 = memref.load %arg1[%c76] : memref<81xf32, #tpu.memory_space<smem>>
    %308 = vector.broadcast %307 : f32 to vector<14x14xf32>
    %309 = arith.mulf %308, %298 : vector<14x14xf32>
    %310 = arith.addf %297, %309 : vector<14x14xf32>
    %311 = vector.extract_strided_slice %245 {offsets = [1, 2], sizes = [14, 14], strides = [1, 1]} : vector<16x16xf32> to vector<14x14xf32>
    %c23 = arith.constant 23 : index
    %312 = memref.load %arg1[%c23] : memref<81xf32, #tpu.memory_space<smem>>
    %313 = vector.broadcast %312 : f32 to vector<14x14xf32>
    %314 = arith.mulf %313, %311 : vector<14x14xf32>
    %315 = arith.addf %302, %314 : vector<14x14xf32>
    %c50 = arith.constant 50 : index
    %316 = memref.load %arg1[%c50] : memref<81xf32, #tpu.memory_space<smem>>
    %317 = vector.broadcast %316 : f32 to vector<14x14xf32>
    %318 = arith.mulf %317, %311 : vector<14x14xf32>
    %319 = arith.addf %306, %318 : vector<14x14xf32>
    %c77 = arith.constant 77 : index
    %320 = memref.load %arg1[%c77] : memref<81xf32, #tpu.memory_space<smem>>
    %321 = vector.broadcast %320 : f32 to vector<14x14xf32>
    %322 = arith.mulf %321, %311 : vector<14x14xf32>
    %323 = arith.addf %310, %322 : vector<14x14xf32>
    %324 = vector.extract_strided_slice %245 {offsets = [2, 0], sizes = [14, 14], strides = [1, 1]} : vector<16x16xf32> to vector<14x14xf32>
    %c24 = arith.constant 24 : index
    %325 = memref.load %arg1[%c24] : memref<81xf32, #tpu.memory_space<smem>>
    %326 = vector.broadcast %325 : f32 to vector<14x14xf32>
    %327 = arith.mulf %326, %324 : vector<14x14xf32>
    %328 = arith.addf %315, %327 : vector<14x14xf32>
    %c51 = arith.constant 51 : index
    %329 = memref.load %arg1[%c51] : memref<81xf32, #tpu.memory_space<smem>>
    %330 = vector.broadcast %329 : f32 to vector<14x14xf32>
    %331 = arith.mulf %330, %324 : vector<14x14xf32>
    %332 = arith.addf %319, %331 : vector<14x14xf32>
    %c78 = arith.constant 78 : index
    %333 = memref.load %arg1[%c78] : memref<81xf32, #tpu.memory_space<smem>>
    %334 = vector.broadcast %333 : f32 to vector<14x14xf32>
    %335 = arith.mulf %334, %324 : vector<14x14xf32>
    %336 = arith.addf %323, %335 : vector<14x14xf32>
    %337 = vector.extract_strided_slice %245 {offsets = [2, 1], sizes = [14, 14], strides = [1, 1]} : vector<16x16xf32> to vector<14x14xf32>
    %c25 = arith.constant 25 : index
    %338 = memref.load %arg1[%c25] : memref<81xf32, #tpu.memory_space<smem>>
    %339 = vector.broadcast %338 : f32 to vector<14x14xf32>
    %340 = arith.mulf %339, %337 : vector<14x14xf32>
    %341 = arith.addf %328, %340 : vector<14x14xf32>
    %c52 = arith.constant 52 : index
    %342 = memref.load %arg1[%c52] : memref<81xf32, #tpu.memory_space<smem>>
    %343 = vector.broadcast %342 : f32 to vector<14x14xf32>
    %344 = arith.mulf %343, %337 : vector<14x14xf32>
    %345 = arith.addf %332, %344 : vector<14x14xf32>
    %c79 = arith.constant 79 : index
    %346 = memref.load %arg1[%c79] : memref<81xf32, #tpu.memory_space<smem>>
    %347 = vector.broadcast %346 : f32 to vector<14x14xf32>
    %348 = arith.mulf %347, %337 : vector<14x14xf32>
    %349 = arith.addf %336, %348 : vector<14x14xf32>
    %350 = vector.extract_strided_slice %245 {offsets = [2, 2], sizes = [14, 14], strides = [1, 1]} : vector<16x16xf32> to vector<14x14xf32>
    %c26 = arith.constant 26 : index
    %351 = memref.load %arg1[%c26] : memref<81xf32, #tpu.memory_space<smem>>
    %352 = vector.broadcast %351 : f32 to vector<14x14xf32>
    %353 = arith.mulf %352, %350 : vector<14x14xf32>
    %354 = arith.addf %341, %353 : vector<14x14xf32>
    %c53 = arith.constant 53 : index
    %355 = memref.load %arg1[%c53] : memref<81xf32, #tpu.memory_space<smem>>
    %356 = vector.broadcast %355 : f32 to vector<14x14xf32>
    %357 = arith.mulf %356, %350 : vector<14x14xf32>
    %358 = arith.addf %345, %357 : vector<14x14xf32>
    %c80 = arith.constant 80 : index
    %359 = memref.load %arg1[%c80] : memref<81xf32, #tpu.memory_space<smem>>
    %360 = vector.broadcast %359 : f32 to vector<14x14xf32>
    %361 = arith.mulf %360, %350 : vector<14x14xf32>
    %362 = arith.addf %349, %361 : vector<14x14xf32>
    %c0_15 = arith.constant 0 : index
    %c0_16 = arith.constant 0 : index
    %c0_17 = arith.constant 0 : index
    %c0_18 = arith.constant 0 : index
    %363 = vector.load %arg4[%c0_15, %c0_16, %c0_17, %c0_18] : memref<1x3x14x14xf32, #tpu.memory_space<vmem>>, vector<1x1x14x14xf32>
    %364 = vector.shape_cast %363 : vector<1x1x14x14xf32> to vector<14x14xf32>
    %365 = vector.shape_cast %354 : vector<14x14xf32> to vector<1x1x14x14xf32>
    tpu.vector_store %arg4[%c0_15, %c0_16, %c0_17, %c0_18], %365 {strides = array<i32>} : memref<1x3x14x14xf32, #tpu.memory_space<vmem>>, vector<1x1x14x14xf32>,
    %c0_19 = arith.constant 0 : index
    %c1_20 = arith.constant 1 : index
    %c0_21 = arith.constant 0 : index
    %c0_22 = arith.constant 0 : index
    %366 = vector.load %arg4[%c0_19, %c1_20, %c0_21, %c0_22] : memref<1x3x14x14xf32, #tpu.memory_space<vmem>>, vector<1x1x14x14xf32>
    %367 = vector.shape_cast %366 : vector<1x1x14x14xf32> to vector<14x14xf32>
    %368 = vector.shape_cast %358 : vector<14x14xf32> to vector<1x1x14x14xf32>
    tpu.vector_store %arg4[%c0_19, %c1_20, %c0_21, %c0_22], %368 {strides = array<i32>} : memref<1x3x14x14xf32, #tpu.memory_space<vmem>>, vector<1x1x14x14xf32>,
    %c0_23 = arith.constant 0 : index
    %c2_24 = arith.constant 2 : index
    %c0_25 = arith.constant 0 : index
    %c0_26 = arith.constant 0 : index
    %369 = vector.load %arg4[%c0_23, %c2_24, %c0_25, %c0_26] : memref<1x3x14x14xf32, #tpu.memory_space<vmem>>, vector<1x1x14x14xf32>
    %370 = vector.shape_cast %369 : vector<1x1x14x14xf32> to vector<14x14xf32>
    %371 = vector.shape_cast %362 : vector<14x14xf32> to vector<1x1x14x14xf32>
    tpu.vector_store %arg4[%c0_23, %c2_24, %c0_25, %c0_26], %371 {strides = array<i32>} : memref<1x3x14x14xf32, #tpu.memory_space<vmem>>, vector<1x1x14x14xf32>,
    return
  }
  func.func @transform_0(%arg0: i32) -> i32 {
    %c0_i32 = arith.constant 0 : i32
    %c0_i32_0 = arith.constant 0 : i32
    return %c0_i32 : i32
  }
  func.func @transform_1(%arg0: i32) -> i32 {
    %c0_i32 = arith.constant 0 : i32
    %c0_i32_0 = arith.constant 0 : i32
    return %c0_i32 : i32
  }
  func.func @transform_2(%arg0: i32) -> (i32, i32, i32, i32) {
    %c0_i32 = arith.constant 0 : i32
    %c0_i32_0 = arith.constant 0 : i32
    %c0_i32_1 = arith.constant 0 : i32
    %c0_i32_2 = arith.constant 0 : i32
    return %arg0, %c0_i32, %c0_i32_0, %c0_i32_1 : i32, i32, i32, i32
  }
  func.func @transform_3(%arg0: i32) -> (i32, i32, i32, i32) {
    %c0_i32 = arith.constant 0 : i32
    %c0_i32_0 = arith.constant 0 : i32
    %c0_i32_1 = arith.constant 0 : i32
    %c0_i32_2 = arith.constant 0 : i32
    return %arg0, %c0_i32, %c0_i32_0, %c0_i32_1 : i32, i32, i32, i32
  }
}

</mosaic_0001>

<bundles_post_ra>
// kernel: tpu_custom_call.1
= control target key start
LH: loop header
LB: loop body
LE: loop exit
PB: predicated region body
PF: predicated region fallthrough
CT: control target
= control target key end

     0   :  { %8 = vsyncpa [#allocation4], 0  ;;  %s2584_s0 = inlined_call_operand.hbm [shape: f32[81], index: 0, kind: input, shape index: {}]   ;;  %s2585_s1 = inlined_call_operand.vmem [shape: f32[3], index: 1, kind: input, shape index: {}]   ;;  %s2586_s2 = inlined_call_operand.hbm [shape: f32[2,3,16,16], index: 2, kind: input, shape index: {}]   ;;  %s2587_s3 = inlined_call_operand.vmem [shape: f32[2,3,14,14], index: 3, kind: output, shape index: {}]  }
   0x1   :  { %9 = vsyncpa [#allocation5], 0 }
   0x2   :  { %10 = vsyncpa [#allocation3], 0 }
   0x3   :  { %12 = vsyncpa [#allocation3 + $0x1], 0  ;;  %s1784_s12 = smov 0   ;;  %s1786_s13 = smov 0  }
   0x4   :  { %s1788_s14 = smov 0   ;;  %s1790_s15 = smov 0  }
   0x5 LB: > { %s1803_s16 = sadd.s32 4294967295, %s1755_s15   ;;  %s1806_s17 = sadd.s32 1, %s1755_s15   ;;  %s1755_s15 = sphi %s1790_s15, %s2602_s15   ;;  %s1751_s14 = sphi %s1788_s14, %s2601_s14   ;;  %s1747_s13 = sphi %s1786_s13, %s2600_s13   ;;  %s1743_s12 = sphi %s1784_s12, %s2599_s12  }
   0x6   : > { %s64_s18 = ssub.s32 %s1755_s15, %s1806_s17  ;;  %s67_s19 = sadd.s32 1, %s1751_s14 }
   0x7   : > { %p65_p0 = scmp.eq.s32.totalorder %s64_s18, 0  ;;  %p74_p1 = scmp.ne.s32.totalorder %s1751_s14, %s1747_s13 }
   0x8   : > { %p75_p2 = scmp.eq.s32.totalorder %s1755_s15, 0  ;;  %p80_p3 = scmp.ne.s32.totalorder %s1747_s13, %s1743_s12 }
   0x9   : > { %s1816_s20 = scalar_select %p65_p0, %s1751_s14, %s67_s19  }
   0xa   : > { %p76_p4 = por %p75_p2, %p74_p1  ;;  %p2588_p5 = scmp.eq.s32.totalorder %s1803_s16, 0 }
   0xb   : > { %p1486_p6 = scmp.ge.s32.totalorder %s1755_s15, 1  ;;  %p117_p7 = scmp.lt.s32.totalorder %s1755_s15, 3 }
   0xc   : > { %p1823_p8 = por %p2588_p5, %p80_p3  ;;  %p1614_p10 = scmp.lt.s32.totalorder %s1755_s15, 2 }
   0xd   : > { %p1827_p9 = pnand %p1486_p6, %p117_p7  ;;  %s139_s25 = sshll.u32 %s2585_s1, 4  ;;  %s140_s25 = int_to_ptr.vmem [resolvable:$true] %s139_s25 }
   0xe   : > { %s2590_s21 = scalar_select %p1823_p8, 1, 0 }
   0xf   : > { %p1601_p11 = pneg %p1827_p9  ;;  %p1837_p12 = pnand %p1614_p10, %p76_p4 }
  0x10   : > { %s150_s28 = sand.u32 1, %s1751_s14   ;;  %s1655_s4 = scalar_lea.hbm %s2584_s0, 16 }
  0x11   : > { %p1843_p13 = pnand %p1601_p11, %p2588_p5  ;;  %p1656_p0 = scmp.ne.s32.totalorder %s2584_s0, %s1655_s4 }
  0x12   : > { %p1662_p4 = scmp.lt.u32.totalorder %s1655_s4, %s2584_s0 }
  0x13   : > { %p1657_p1 = pneg %p1843_p13 }
  0x15   : > { %p1658_p2 = pnand %p1657_p1, %p1656_p0 }
  0x17   : > { %p1659_p3 = pneg %p1658_p2 }
  0x19   : > { %p1664_p6 = pnand %p1662_p4, %p1659_p3 }
  0x1b   : > { %1667 = shalt.err (!%p1664_p6)
}
  0x1c   : > { %s1757_s9 = smov [#allocation2]   ;;  %s1668_s12 = scalar_lea.vmem %s140_s25, 16 }
  0x1d   : > { %1604 = dma.hbm_to_smem (!%p1843_p13), %s2584_s0, 16, %s1757_s9, [#allocation4]  }
  0x1e   : > { %p1669_p7 = scmp.ne.s32.totalorder %s140_s25, %s1668_s12  ;;  %p1676_p5 = scmp.lt.s32.totalorder %s140_s25, %s140_s25 }
  0x1f   : > { %p1677_p0 = scmp.lt.s32.totalorder %s1668_s12, %s1668_s12 }
  0x20   : > { %p1671_p10 = pnand %p1669_p7, %p1657_p1 }
  0x21   : > { %p1678_p2 = por %p1677_p0, %p1676_p5 }
  0x22   : > { %p1672_p11 = pneg %p1671_p10 }
  0x24   : > { %p1679_p8 = pnand %p1678_p2, %p1672_p11 }
  0x26   : > { %1682 = shalt.err (!%p1679_p8)
}
  0x27   : > { %s1758_s18 = smov [#allocation6]   ;;  %s1587_s19 = smul.u32 48, %s150_s28 }
  0x28   : > { %1607 = dma.vmem_to_smem (!%p1843_p13), %s140_s25, 16, %s1758_s18, [#allocation5]  }
  0x29   : > { %s1588_s23 = smul.u32 768, %s1755_s15  ;;  %s154_s4 = scalar_lea.vmem [#allocation7], %s1587_s19 }
  0x2a   : > { %s161_s5 = sshll.u32 %s154_s4, 4  ;;  %s1874_s27 = scalar_lea.sflag [#allocation3], %s150_s28  ;;  %s1872_s5 = int_to_ptr.vmem [resolvable:$true] %s161_s5 }
  0x2b   : > { %s1870_s30 = scalar_lea.hbm %s2586_s2, %s1588_s23  ;;  %p1685_p8 = pneg %p1837_p12 }
  0x2c   : > { %s1683_s6 = scalar_lea.hbm %s1870_s30, 768  ;;  %s1688_s7 = scalar_lea.hbm %s2586_s2, 1536 }
  0x2d   : > { %p1684_p5 = scmp.ne.s32.totalorder %s1870_s30, %s1683_s6  ;;  %p1689_p3 = scmp.lt.u32.totalorder %s1870_s30, %s2586_s2 }
  0x2e   : > { %p1690_p4 = scmp.lt.u32.totalorder %s1688_s7, %s1683_s6  ;;  %p1692_p7 = scmp.lt.u32.totalorder %s1683_s6, %s1870_s30 }
  0x2f   : > { %p1686_p13 = pnand %p1685_p8, %p1684_p5 }
  0x30   : > { %p1691_p6 = por %p1690_p4, %p1689_p3 }
  0x31   : > { %p1687_p1 = pneg %p1686_p13 }
  0x32   : > { %p1693_p10 = por %p1692_p7, %p1691_p6 }
  0x34   : > { %p1694_p11 = pnand %p1693_p10, %p1687_p1 }
  0x36   : > { %1697 = shalt.err (!%p1694_p11)
}
  0x37   : > { %s1698_s28 = scalar_lea.vmem %s1872_s5, 768  ;;  %s1759_s10 = smov [#allocation7]  }
  0x38   : > { %p1699_p0 = scmp.ne.s32.totalorder %s1872_s5, %s1698_s28  ;;  %s1703_s11 = sshll.u32 %s1759_s10, 4  ;;  %s1704_s11 = int_to_ptr.vmem [resolvable:$false] %s1703_s11 }
  0x39   : > { %s1705_s12 = scalar_lea.vmem %s1704_s11, 1536  ;;  %p1706_p13 = scmp.lt.s32.totalorder %s1872_s5, %s1704_s11 }
  0x3a   : > { %p1701_p2 = pnand %p1699_p0, %p1685_p8  ;;  %p1707_p3 = scmp.lt.s32.totalorder %s1705_s12, %s1698_s28 }
  0x3c   : > { %p1702_p5 = pneg %p1701_p2  ;;  %p1708_p4 = por %p1707_p3, %p1706_p13 }
  0x3e   : > { %p1709_p6 = pnand %p1708_p4, %p1702_p5 }
  0x40   : > { %1712 = shalt.err (!%p1709_p6)
}
  0x41   : > { %s1760_s18 = smov 128   ;;  %s1761_s19 = smov 8  }
  0x42   : > { %1611 = dma.hbm_to_vmem [thread:$0]  (!%p1837_p12), %s1870_s30, 768, %s1872_s5, %s1874_s27, %s1760_s18, %s1760_s18, %s1761_s19  }
  0x43   : > { %173 = sbr.rel (%p1827_p9) target bundleno = 426 (0x1aa), region = 32  ;;  %p2594_p8 = scmp.eq.s32.totalorder (!%p1827_p9), %s1803_s16, 0 }
  0x4a   : > { %1730 = dma.done.wait (%p2594_p8), [#allocation4], 16   ;;  %p2595_p1 = pmov %p2594_p8 }
  0x4c   : > { %1732 = vsyncadd (%p2595_p1), [#allocation4], 4294967280  ;;  %p2596_p7 = pmov %p2595_p1 }
  0x4d   : > { %p2597_p10 = pmov %p2595_p1 }
  0x4e   : > { %1734 = dma.done.wait (%p2596_p7), [#allocation5], 16  }
  0x4f   : > { %1736 = vsyncadd (%p2597_p10), [#allocation5], 4294967280  ;;  %s183_s23 = sand.u32 1, %s1747_s13   ;;  %p2598_p9 = scmp.ne.s32.totalorder %s2590_s21, 0 }
  0x50   : > { %s1589_s26 = smul.u32 48, %s183_s23  ;;  %s184_s24 = scalar_lea.sflag [#allocation3], %s183_s23 }
  0x52   : > { %s1913_s29 = scalar_lea.vmem [#allocation7], %s1589_s26 }
  0x53   : > { %1738 = dma.done.wait (%p2598_p9), %s184_s24, 768  }
  0x54   : > { %1740 = vsyncadd (%p2598_p9), %s184_s24, 4294966528 }
  0x55   : > { %192 = sfence }
  0x56   : > { %s1500_s22 = sld [smem:[#allocation2 + $0x1c]]  ;;  %s1499_s30 = sld [smem:[#allocation2 + $0x1]]  ;;  %v1920_v0 = vld [vmem:[%s1913_s29] sm:$0xff]  ;;  %v1923_v1 = vld [vmem:[%s1913_s29 + $0x8] sm:$0xff]  ;;  %vm332_vm0 = vcmask 1046528   ;;  %vm474_vm1 = vcmask 1045504  }
  0x57   : > { %s1501_s4 = sld [smem:[#allocation2 + $0x37]]  ;;  %s1502_s5 = sld [smem:[#allocation2 + $0x2]]  ;;  %vm1386_vm2 = vcmask 111616   ;;  %vm1384_vm3 = vcmask 113664  }
  0x58   : > { %s1762_s21 = smov 127   ;;  %s1503_s27 = sld [smem:[#allocation2 + $0x1d]] }
  0x59   : > { %s1508_s6 = sld [smem:[#allocation2 + $0x4]]  ;;  %s1504_s15 = sld [smem:[#allocation2 + $0x38]] }
  0x5a   : > { %s1509_s25 = sld [smem:[#allocation2 + $0x1f]]  ;;  %s1510_s7 = sld [smem:[#allocation2 + $0x3a]] }
  0x5b   : > { %s1763_s8 = smov 126   ;;  %s1943_s9 = sld [smem:[#allocation2 + $0x5]] }
  0x5c   : > { %v257_v2 = vstv %s1500_s22  ;;  %v243_v4 = vstv %s1499_s30  ;;  %s1512_s28 = sld [smem:[#allocation2 + $0x20]]  ;;  %s1513_s10 = sld [smem:[#allocation2 + $0x3b]] }
  0x5d   : > { %v258_v3 = vmul.f32 %v257_v2, %v1920_v0  ;;  %v244_v5 = vmul.f32 %v243_v4, %v1920_v0  ;;  %v259_v6 = vmul.f32 %v257_v2, %v1923_v1  ;;  %v245_v7 = vmul.f32 %v243_v4, %v1923_v1  ;;  %s1517_s11 = sld [smem:[#allocation2 + $0x7]]  ;;  %s1518_s12 = sld [smem:[#allocation2 + $0x22]] }
  0x5e   : > { %v271_v8 = vstv %s1501_s4  ;;  %v285_v11 = vstv %s1502_s5  ;;  %v299_v14 = vstv %s1503_s27  ;;  %s1974_s18 = sld [smem:[#allocation2 + $0x3d]]  ;;  %s1977_s19 = sld [smem:[#allocation2 + $0x3]] }
  0x5f   : > { %262 = vrot.lane.b32.xlu1 %v258_v3, %s1762_s21  ;;  %248 = vrot.lane.b32.xlu0 %v244_v5, %s1762_s21  ;;  %v273_v9 = vmul.f32 %v271_v8, %v1923_v1  ;;  %v272_v10 = vmul.f32 %v271_v8, %v1920_v0  ;;  %v287_v12 = vmul.f32 %v285_v11, %v1923_v1  ;;  %v367_v15 = vstv %s1508_s6  ;;  %s1982_s23 = sld [smem:[#allocation2 + $0x8]]  ;;  %s1985_s26 = sld [smem:[#allocation2 + $0x1e]] }
  0x60   : > { %v286_v13 = vmul.f32 %v285_v11, %v1920_v0  ;;  %v301_v16 = vmul.f32 %v299_v14, %v1923_v1  ;;  %v300_v17 = vmul.f32 %v299_v14, %v1920_v0  ;;  %v313_v18 = vstv %s1504_s15  ;;  %s1993_s24 = sld [smem:[#allocation2 + $0x23]]  ;;  %s1995_s22 = sld [smem:[#allocation2 + $0x39]] }
  0x61   : > { %v368_v19 = vmul.f32 %v367_v15, %v1920_v0  ;;  %v369_v20 = vmul.f32 %v367_v15, %v1923_v1  ;;  %v384_v21 = vstv %s1509_s25  ;;  %v315_v22 = vmul.f32 %v313_v18, %v1923_v1  ;;  %s1998_s30 = sld [smem:[#allocation2 + $0x3e]]  ;;  %s2023_s5 = sld [smem:[#allocation2 + $0x21]] }
  0x62   : > { %v314_v23 = vmul.f32 %v313_v18, %v1920_v0  ;;  %v386_v24 = vmul.f32 %v384_v21, %v1923_v1  ;;  %v385_v27 = vmul.f32 %v384_v21, %v1920_v0  ;;  %v401_v28 = vstv %s1510_s7  ;;  %s2011_s4 = sld [smem:[#allocation2 + $0x6]]  ;;  %s2039_s27 = sld [smem:[#allocation2 + $0x3c]] }
  0x63   : > { %264 = vrot.lane.b32.xlu1 %v259_v6, %s1762_s21  ;;  %250 = vrot.lane.b32.xlu0 %v245_v7, %s1762_s21  ;;  %v373_v25 = vrot.slane %v369_v20, 1  ;;  %v372_v26 = vrot.slane %v368_v19, 1  ;;  %v418_v30 = vstv %s1943_s9  ;;  %v402_v33 = vmul.f32 %v401_v28, %v1920_v0  ;;  %s2063_s6 = sld [smem:[#allocation2 + $0xa]]  ;;  %s1529_s15 = sld [smem:[#allocation2 + $0x25]] }
  0x64   : > { %v390_v29 = vrot.slane %v386_v24, 1  ;;  %v389_v32 = vrot.slane %v385_v27, 1  ;;  %v403_v34 = vmul.f32 %v401_v28, %v1923_v1  ;;  %v419_v35 = vmul.f32 %v418_v30, %v1920_v0  ;;  %s1530_s25 = sld [smem:[#allocation2 + $0x40]]  ;;  %s1531_s7 = sld [smem:[#allocation2 + $0xb]] }
  0x65   : > { %v374_v31 = vsel %vm332_vm0, %v372_v26, %v373_v25  ;;  %v435_v36 = vstv %s1512_s28  ;;  %v406_v39 = vrot.slane %v402_v33, 1  ;;  %v420_v40 = vmul.f32 %v418_v30, %v1923_v1  ;;  %s1532_s9 = sld [smem:[#allocation2 + $0x26]]  ;;  %s1537_s28 = sld [smem:[#allocation2 + $0xd]] }
  0x66   : > { %v391_v37 = vsel %vm332_vm0, %v389_v32, %v390_v29  ;;  %v407_v38 = vrot.slane %v403_v34, 1  ;;  %v436_v41 = vmul.f32 %v435_v36, %v1920_v0  ;;  %v437_v42 = vmul.f32 %v435_v36, %v1923_v1  ;;  %p211_p12 = scmp.lt.s32.totalorder %s1803_s16, 1 }
  0x67   : > { %278 = vrot.lane.b32.xlu1 %v273_v9, %s1762_s21  ;;  %276 = vrot.lane.b32.xlu0 %v272_v10, %s1762_s21  ;;  %v424_v44 = vrot.slane %v420_v40, 1  ;;  %v423_v45 = vrot.slane %v419_v35, 1  ;;  %v452_v46 = vstv %s1513_s10  ;;  %v509_v52 = vstv %s1517_s11  ;;  %s1533_s10 = sld [smem:[#allocation2 + $0x41]]  ;;  %s1538_s11 = sld [smem:[#allocation2 + $0x28]] }
  0x68   : > { %v408_v43 = vsel %vm332_vm0, %v406_v39, %v407_v38  ;;  %v441_v47 = vrot.slane %v437_v42, 1  ;;  %v440_v48 = vrot.slane %v436_v41, 1  ;;  %v453_v50 = vmul.f32 %v452_v46, %v1920_v0  ;;  %s2604_s16 = smov (!%p211_p12, %s1803_s16), 1 }
  0x69   : > { %v425_v49 = vsel %vm332_vm0, %v423_v45, %v424_v44  ;;  %v454_v51 = vmul.f32 %v452_v46, %v1923_v1  ;;  %v510_v54 = vmul.f32 %v509_v52, %v1920_v0  ;;  %v511_v57 = vmul.f32 %v509_v52, %v1923_v1 }
  0x6a   : > { %v442_v53 = vsel %vm332_vm0, %v440_v48, %v441_v47  ;;  %v457_v56 = vrot.slane %v453_v50, 1  ;;  %v526_v58 = vstv %s1518_s12  ;;  %v543_v2 = vstv %s1974_s18  ;;  %s1539_s12 = sld [smem:[#allocation2 + $0x43]]  ;;  %s1540_s18 = sld [smem:[#allocation2 + $0xe]] }
  0x6b   : > { %292 = vrot.lane.b32.xlu1 %v287_v12, %s1763_s8  ;;  %290 = vrot.lane.b32.xlu0 %v286_v13, %s1763_s8  ;;  %v458_v55 = vrot.slane %v454_v51, 1  ;;  %v527_v59 = vmul.f32 %v526_v58, %v1920_v0  ;;  %v528_v60 = vmul.f32 %v526_v58, %v1923_v1  ;;  %v515_v62 = vrot.slane %v511_v57, 2 }
  0x6c   : > { %v514_v63 = vrot.slane %v510_v54, 2  ;;  %v327_v3 = vstv %s1977_s19  ;;  %v544_v6 = vmul.f32 %v543_v2, %v1920_v0  ;;  %v560_v7 = vstv %s1982_s23  ;;  %s1541_s19 = sld [smem:[#allocation2 + $0x29]]  ;;  %s1542_s23 = sld [smem:[#allocation2 + $0x44]] }
  0x6d   : > { %v459_v61 = vsel %vm332_vm0, %v457_v56, %v458_v55  ;;  %v532_v4 = vrot.slane %v528_v60, 2  ;;  %v531_v5 = vrot.slane %v527_v59, 2  ;;  %v545_v9 = vmul.f32 %v543_v2, %v1923_v1  ;;  %v2097_v2 = vld [vmem:[%s1913_s29 + $0x18] sm:$0xff] }
  0x6e   : > { %v516_v8 = vsel %vm474_vm1, %v514_v63, %v515_v62  ;;  %v2007_v10 = vmul.f32 %v327_v3, %v1923_v1  ;;  %v328_v11 = vmul.f32 %v327_v3, %v1920_v0  ;;  %v341_v12 = vstv %s1985_s26  ;;  %s1546_s26 = sld [smem:[#allocation2 + $0x10]] }
  0x6f   : > { %306 = vrot.lane.b32.xlu1 %v301_v16, %s1763_s8  ;;  %304 = vrot.lane.b32.xlu0 %v300_v17, %s1763_s8  ;;  %v561_v13 = vmul.f32 %v560_v7, %v1920_v0  ;;  %v533_v16 = vsel %vm474_vm1, %v531_v5, %v532_v4  ;;  %v562_v17 = vmul.f32 %v560_v7, %v1923_v1  ;;  %v549_v20 = vrot.slane %v545_v9, 2  ;;  %v2102_v5 = vld [vmem:[%s1913_s29 + $0x10] sm:$0xff] }
  0x70   : > { %v334_v14 = vrot.slane %v2007_v10, 1  ;;  %v333_v15 = vrot.slane %v328_v11, 1  ;;  %v2020_v18 = vmul.f32 %v341_v12, %v1923_v1  ;;  %v342_v19 = vmul.f32 %v341_v12, %v1920_v0 }
  0x71   : > { %v548_v21 = vrot.slane %v544_v6, 2  ;;  %v354_v26 = vstv %s1995_s22  ;;  %v594_v27 = vstv %s1998_s30  ;;  %v566_v30 = vrot.slane %v562_v17, 2  ;;  %s2156_s22 = sld [smem:[#allocation2]]  ;;  %s2161_s30 = sld [smem:[#allocation2 + $0x46]] }
  0x72   : > { %v347_v24 = vrot.slane %v2020_v18, 1  ;;  %v2036_v28 = vmul.f32 %v354_v26, %v1923_v1  ;;  %v595_v39 = vmul.f32 %v594_v27, %v1920_v0  ;;  %v483_v45 = vstv %s2023_s5  ;;  %s2167_s5 = sld [smem:[#allocation6]] }
  0x73   : > { %320 = vrot.lane.b32.xlu1 %v315_v22, %s1763_s8  ;;  %318 = vrot.lane.b32.xlu0 %v314_v23, %s1763_s8  ;;  %v577_v22 = vstv %s1993_s24  ;;  %v2029_v23 = vsel %vm332_vm0, %v333_v15, %v334_v14  ;;  %v550_v34 = vsel %vm474_vm1, %v548_v21, %v549_v20  ;;  %v2072_v51 = vmul.f32 %v483_v45, %v1923_v1  ;;  %s2152_s24 = sld [smem:[#allocation2 + $0x2b]] }
  0x74   : > { %v578_v32 = vmul.f32 %v577_v22, %v1920_v0  ;;  %v579_v35 = vmul.f32 %v577_v22, %v1923_v1  ;;  %v360_v36 = vrot.slane %v2036_v28, 1  ;;  %v599_v58 = vrot.slane %v595_v39, 2 }
  0x75   : > { %v489_v56 = vrot.slane %v2072_v51, 2  ;;  %v632_v3 = vstv %s2063_s6  ;;  %v646_v9 = vstv %s1529_s15  ;;  %v674_v17 = vstv %s1531_s7  ;;  %s2176_s6 = sld [smem:[#allocation6 + $0x1]]  ;;  %s2180_s15 = sld [smem:[#allocation2 + $0x36]] }
  0x76   : > { %v583_v46 = vrot.slane %v579_v35, 2  ;;  %v634_v7 = vmul.f32 %v2097_v2, %v632_v3  ;;  %v648_v11 = vmul.f32 %v2097_v2, %v646_v9  ;;  %v647_v12 = vmul.f32 %v2102_v5, %v646_v9  ;;  %s2192_s7 = sld [smem:[#allocation6 + $0x2]] }
  0x77   : > { %377 = vrot.lane.b32.xlu1 %v373_v25, %s1762_s21  ;;  %375 = vrot.lane.b32.xlu0 %v374_v31, %s1762_s21  ;;  %v346_v25 = vrot.slane %v342_v19, 1  ;;  %v565_v31 = vrot.slane %v561_v13, 2  ;;  %v660_v13 = vstv %s1530_s25  ;;  %v676_v19 = vmul.f32 %v2097_v2, %v674_v17  ;;  %s2188_s25 = sld [smem:[#allocation2 + $0x2c]] }
  0x78   : > { %v662_v15 = vmul.f32 %v2097_v2, %v660_v13  ;;  %v688_v21 = vstv %s1532_s9  ;;  %v755_v22 = vstv %s1537_s28  ;;  %v789_v35 = vstv %s1539_s12  ;;  %s2203_s9 = sld [smem:[#allocation2 + $0x47]]  ;;  %s2229_s28 = sld [smem:[#allocation2 + $0x13]] }
  0x79   : > { %v2046_v33 = vsel %vm332_vm0, %v346_v25, %v347_v24  ;;  %v567_v42 = vsel %vm474_vm1, %v565_v31, %v566_v30  ;;  %v690_v25 = vmul.f32 %v2097_v2, %v688_v21  ;;  %v772_v31 = vstv %s1538_s11  ;;  %s2251_s11 = sld [smem:[#allocation2 + $0x49]]  ;;  %s2272_s12 = sld [smem:[#allocation2 + $0x2f]] }
  0x7a   : > { %v773_v39 = vmul.f32 %v2102_v5, %v772_v31 }
  0x7b   : > { %394 = vrot.lane.b32.xlu1 %v390_v29, %s1762_s21  ;;  %392 = vrot.lane.b32.xlu0 %v391_v37, %s1762_s21  ;;  %v355_v29 = vmul.f32 %v354_v26, %v1920_v0  ;;  %v689_v26 = vmul.f32 %v2102_v5, %v688_v21 }
  0x7d   : > { %v359_v37 = vrot.slane %v355_v29, 1  ;;  %v756_v29 = vmul.f32 %v2102_v5, %v755_v22 }
  0x7f   : > { %411 = vrot.lane.b32.xlu1 %v407_v38, %s1762_s21  ;;  %409 = vrot.lane.b32.xlu0 %v408_v43, %s1762_s21  ;;  %v469_v38 = vstv %s2011_s4  ;;  %v2057_v40 = vsel %vm332_vm0, %v359_v37, %v360_v36  ;;  %v596_v43 = vmul.f32 %v594_v27, %v1923_v1  ;;  %v702_v27 = vstv %s1533_s10  ;;  %s2164_s4 = sld [smem:[#allocation2 + $0x1b]]  ;;  %s2236_s10 = sld [smem:[#allocation2 + $0x2e]] }
  0x80   : > { %v470_v41 = vmul.f32 %v469_v38, %v1920_v0  ;;  %v1047_v18 = vstv %s2251_s11  ;;  %s2394_s11 = sld [smem:[#allocation2 + $0x27]] }
  0x81   : > { %v600_v54 = vrot.slane %v596_v43, 2 }
  0x82   : > { %v475_v48 = vrot.slane %v470_v41, 2  ;;  %v774_v41 = vmul.f32 %v2097_v2, %v772_v31 }
  0x83   : > { %428 = vrot.lane.b32.xlu1 %v424_v44, %s1763_s8  ;;  %426 = vrot.lane.b32.xlu0 %v425_v49, %s1763_s8  ;;  %v2066_v44 = vmul.f32 %v469_v38, %v1923_v1  ;;  %v484_v49 = vmul.f32 %v483_v45, %v1920_v0  ;;  %v760_v38 = vrot.slane %v756_v29, 1 }
  0x84   : > { %v778_v45 = vrot.slane %v774_v41, 1 }
  0x85   : > { %v476_v50 = vrot.slane %v2066_v44, 2  ;;  %v488_v52 = vrot.slane %v484_v49, 2 }
  0x87   : > { %445 = vrot.lane.b32.xlu1 %v441_v47, %s1763_s8  ;;  %443 = vrot.lane.b32.xlu0 %v442_v53, %s1763_s8  ;;  %v582_v47 = vrot.slane %v578_v32, 2  ;;  %v496_v53 = vstv %s2039_s27  ;;  %v704_v32 = vmul.f32 %v2097_v2, %v702_v27  ;;  %s2172_s27 = sld [smem:[#allocation2 + $0x11]] }
  0x88   : > { %v497_v59 = vmul.f32 %v496_v53, %v1920_v0  ;;  %v2086_v60 = vmul.f32 %v496_v53, %v1923_v1 }
  0x89   : > { %v584_v57 = vsel %vm474_vm1, %v582_v47, %v583_v46  ;;  %v790_v47 = vmul.f32 %v2102_v5, %v789_v35 }
  0x8a   : > { %v502_v63 = vrot.slane %v2086_v60, 2 }
  0x8b   : > { %462 = vrot.lane.b32.xlu1 %v458_v55, %s1763_s8  ;;  %460 = vrot.lane.b32.xlu0 %v459_v61, %s1763_s8  ;;  %v2080_v55 = vsel %vm474_vm1, %v475_v48, %v476_v50  ;;  %v2091_v61 = vsel %vm474_vm1, %v488_v52, %v489_v56  ;;  %v806_v48 = vstv %s1540_s18  ;;  %v823_v52 = vstv %s1541_s19  ;;  %s2274_s18 = sld [smem:[#allocation2 + $0x16]]  ;;  %s2281_s19 = sld [smem:[#allocation2 + $0x4a]] }
  0x8f   : > { %519 = vrot.lane.b32.xlu1 %v515_v62, %s1762_s21  ;;  %517 = vrot.lane.b32.xlu0 %v516_v8, %s1762_s21  ;;  %v501_v62 = vrot.slane %v497_v59, 2  ;;  %v633_v8 = vmul.f32 %v2102_v5, %v632_v3  ;;  %v824_v59 = vmul.f32 %v2102_v5, %v823_v52 }
  0x91   : > { %v2107_v6 = vsel %vm474_vm1, %v501_v62, %v502_v63  ;;  %v825_v62 = vmul.f32 %v2097_v2, %v823_v52  ;;  %v1089_v44 = vstv %s2281_s19  ;;  %s1563_s19 = sld [smem:[#allocation2 + $0x15]] }
  0x93   : > { %536 = vrot.lane.b32.xlu1 %v532_v4, %s1762_s21  ;;  %534 = vrot.lane.b32.xlu0 %v533_v16, %s1762_s21  ;;  %v601_v4 = vsel %vm474_vm1, %v599_v58, %v600_v54  ;;  %v661_v16 = vmul.f32 %v2102_v5, %v660_v13  ;;  %v808_v58 = vmul.f32 %v2097_v2, %v806_v48  ;;  %v829_v9 = vrot.slane %v825_v62, 1 }
  0x97   : > { %553 = vrot.lane.b32.xlu1 %v549_v20, %s1762_s21  ;;  %551 = vrot.lane.b32.xlu0 %v550_v34, %s1762_s21  ;;  %v675_v20 = vmul.f32 %v2102_v5, %v674_v17  ;;  %v703_v34 = vmul.f32 %v2102_v5, %v702_v27 }
  0x9b   : > { %570 = vrot.lane.b32.xlu1 %v566_v30, %s1763_s8  ;;  %568 = vrot.lane.b32.xlu0 %v567_v42, %s1763_s8  ;;  %v757_v30 = vmul.f32 %v2097_v2, %v755_v22  ;;  %v791_v42 = vmul.f32 %v2097_v2, %v789_v35  ;;  %v930_v35 = vstv %s2161_s30  ;;  %s2326_s30 = sld [smem:[#allocation2 + $0x4d]] }
  0x9d   : > { %v761_v37 = vrot.slane %v757_v30, 1  ;;  %v795_v49 = vrot.slane %v791_v42, 1 }
  0x9f   : > { %587 = vrot.lane.b32.xlu1 %v583_v46, %s1763_s8  ;;  %585 = vrot.lane.b32.xlu0 %v584_v57, %s1763_s8  ;;  %v762_v43 = vsel %vm332_vm0, %v760_v38, %v761_v37  ;;  %v777_v46 = vrot.slane %v773_v39, 1  ;;  %v807_v57 = vmul.f32 %v2102_v5, %v806_v48  ;;  %v231_v38 = vstv %s2164_s4  ;;  %s2331_s4 = sld [smem:[#allocation2 + $0x9]] }
  0xa0   : > { %v217_v39 = vstv %s2167_s5  ;;  %v932_v48 = vmul.f32 %v2097_v2, %v930_v35  ;;  %s2337_s5 = sld [smem:[#allocation2 + $0x19]] }
  0xa1   : > { %v779_v53 = vsel %vm332_vm0, %v777_v46, %v778_v45 }
  0xa3   : > { %604 = vrot.lane.b32.xlu1 %v600_v54, %s1763_s8  ;;  %602 = vrot.lane.b32.xlu0 %v601_v4, %s1763_s8  ;;  %v794_v54 = vrot.slane %v790_v47, 1  ;;  %v812_v4 = vrot.slane %v808_v58, 1  ;;  %v237_v58 = vstv %s2180_s15  ;;  %s2350_s15 = sld [smem:[#allocation2 + $0x3f]] }
  0xa5   : > { %v796_v3 = vsel %vm332_vm0, %v794_v54, %v795_v49  ;;  %v232_v54 = vmul.f32 %v231_v38, %v1920_v0 }
  0xa7   : > { %639 = vrot.lane.b32.xlu1 %v634_v7, %s1762_s21  ;;  %637 = vrot.lane.b32.xlu0 %v633_v8, %s1762_s21  ;;  %v811_v7 = vrot.slane %v807_v57, 1  ;;  %v840_v8 = vstv %s1542_s23  ;;  %s2283_s23 = sld [smem:[#allocation2 + $0x31]] }
  0xa8   : > { %v841_v13 = vmul.f32 %v2102_v5, %v840_v8 }
  0xaa   : > { %v845_v22 = vrot.slane %v841_v13, 1 }
  0xab   : > { %653 = vrot.lane.b32.xlu1 %v648_v11, %s1762_s21  ;;  %651 = vrot.lane.b32.xlu0 %v647_v12, %s1762_s21  ;;  %v828_v11 = vrot.slane %v824_v59, 1  ;;  %v813_v12 = vsel %vm332_vm0, %v811_v7, %v812_v4  ;;  %v936_v7 = vrot.slane %v932_v48, 2 }
  0xaf   : > { %667 = vrot.lane.b32.xlu1 %v662_v15, %s1762_s21  ;;  %665 = vrot.lane.b32.xlu0 %v661_v16, %s1762_s21  ;;  %v842_v15 = vmul.f32 %v2097_v2, %v840_v8  ;;  %v896_v16 = vstv %s1546_s26  ;;  %s2292_s26 = sld [smem:[#allocation2 + $0x4c]] }
  0xb0   : > { %v897_v17 = vmul.f32 %v2102_v5, %v896_v16 }
  0xb1   : > { %v846_v21 = vrot.slane %v842_v15, 1  ;;  %v239_v15 = vmul.f32 %v237_v58, %v1923_v1 }
  0xb2   : > { %v901_v29 = vrot.slane %v897_v17, 2  ;;  %v238_v17 = vmul.f32 %v237_v58, %v1920_v0 }
  0xb3   : > { %681 = vrot.lane.b32.xlu1 %v676_v19, %s1763_s8  ;;  %679 = vrot.lane.b32.xlu0 %v675_v20, %s1763_s8  ;;  %v898_v19 = vmul.f32 %v2097_v2, %v896_v16  ;;  %v830_v20 = vsel %vm332_vm0, %v828_v11, %v829_v9  ;;  %v847_v31 = vsel %vm332_vm0, %v845_v22, %v846_v21  ;;  %v221_v16 = vstv %s2192_s7  ;;  %s2365_s7 = sld [smem:[#allocation2 + $0x1a]] }
  0xb5   : > { %v902_v27 = vrot.slane %v898_v19, 2 }
  0xb7   : > { %695 = vrot.lane.b32.xlu1 %v690_v25, %s1763_s8  ;;  %693 = vrot.lane.b32.xlu0 %v689_v26, %s1763_s8  ;;  %v913_v25 = vstv %s2152_s24  ;;  %v225_v26 = vstv %s2156_s22  ;;  %v903_v42 = vsel %vm474_vm1, %v901_v29, %v902_v27  ;;  %s2307_s24 = sld [smem:[#allocation2 + $0x17]]  ;;  %s2319_s22 = sld [smem:[#allocation2 + $0x32]] }
  0xb8   : > { %v226_v41 = vmul.f32 %v225_v26, %v1920_v0  ;;  %v227_v11 = vmul.f32 %v225_v26, %v1923_v1  ;;  %v981_v29 = vstv %s2203_s9  ;;  %v240_v0 = vadd.f32 %v238_v17, %v221_v16  ;;  %v2255_v17 = vld [vmem:[%s1913_s29 + $0x20] sm:$0xff]  ;;  %s2380_s9 = sld [smem:[#allocation2 + $0x35]] }
  0xb9   : > { %v1090_v51 = vmul.f32 %v2255_v17, %v1089_v44 }
  0xba   : > { %v228_v57 = vadd.f32 %v226_v41, %v217_v39 }
  0xbb   : > { %709 = vrot.lane.b32.xlu1 %v704_v32, %s1763_s8  ;;  %707 = vrot.lane.b32.xlu0 %v703_v34, %s1763_s8  ;;  %v914_v32 = vmul.f32 %v2102_v5, %v913_v25  ;;  %v915_v34 = vmul.f32 %v2097_v2, %v913_v25 }
  0xbd   : > { %v919_v46 = vrot.slane %v915_v34, 2  ;;  %v918_v47 = vrot.slane %v914_v32, 2  ;;  %v229_v32 = vadd.f32 %v227_v11, %v217_v39  ;;  %v983_v39 = vmul.f32 %v2097_v2, %v981_v29 }
  0xbf   : > { %765 = vrot.lane.b32.xlu1 %v761_v37, %s1762_s21  ;;  %763 = vrot.lane.b32.xlu0 %v762_v43, %s1762_s21  ;;  %v931_v43 = vmul.f32 %v2102_v5, %v930_v35  ;;  %v241_v35 = vadd.f32 %v239_v15, %v221_v16  ;;  %v1019_v15 = vstv %s2229_s28  ;;  %s2385_s28 = sld [smem:[#allocation2 + $0xc]] }
  0xc1   : > { %v935_v8 = vrot.slane %v931_v43, 2  ;;  %v982_v43 = vmul.f32 %v2102_v5, %v981_v29 }
  0xc3   : > { %782 = vrot.lane.b32.xlu1 %v778_v45, %s1762_s21  ;;  %780 = vrot.lane.b32.xlu0 %v779_v53, %s1762_s21  ;;  %v219_v53 = vstv %s2176_s6  ;;  %s2347_s6 = sld [smem:[#allocation2 + $0x34]] }
  0xc4   : > { %v234_v13 = vadd.f32 %v232_v54, %v219_v53 }
  0xc7   : > { %799 = vrot.lane.b32.xlu1 %v795_v49, %s1762_s21  ;;  %797 = vrot.lane.b32.xlu0 %v796_v3, %s1762_s21  ;;  %v947_v49 = vstv %s2172_s27  ;;  %s2343_s27 = sld [smem:[#allocation2 + $0x24]] }
  0xc8   : > { %v948_v59 = vmul.f32 %v2102_v5, %v947_v49  ;;  %v949_v62 = vmul.f32 %v2097_v2, %v947_v49 }
  0xca   : > { %v953_v19 = vrot.slane %v949_v62, 2  ;;  %v986_v62 = vrot.slane %v982_v43, 2 }
  0xcb   : > { %816 = vrot.lane.b32.xlu1 %v812_v4, %s1763_s8  ;;  %814 = vrot.lane.b32.xlu0 %v813_v12, %s1763_s8  ;;  %v920_v4 = vsel %vm474_vm1, %v918_v47, %v919_v46 }
  0xcf   : > { %833 = vrot.lane.b32.xlu1 %v829_v9, %s1763_s8  ;;  %831 = vrot.lane.b32.xlu0 %v830_v20, %s1763_s8  ;;  %v964_v9 = vstv %s2188_s25  ;;  %v952_v20 = vrot.slane %v948_v59, 2  ;;  %s2356_s25 = sld [smem:[#allocation2 + $0x4f]] }
  0xd0   : > { %v966_v26 = vmul.f32 %v2097_v2, %v964_v9 }
  0xd1   : > { %v2182_v30 = vpop.permute.xlu1 %262  ;;  %v249_v37 = vpop.permute.xlu0 %248 }
  0xd2   : > { %v254_v22 = vadd.f32 %v249_v37, %v228_v57 }
  0xd3   : > { %850 = vrot.lane.b32.xlu1 %v846_v21, %s1763_s8  ;;  %848 = vrot.lane.b32.xlu0 %v847_v31, %s1763_s8  ;;  %v965_v21 = vmul.f32 %v2102_v5, %v964_v9  ;;  %v233_v31 = vmul.f32 %v231_v38, %v1923_v1  ;;  %v970_v1 = vrot.slane %v966_v26, 2 }
  0xd5   : > { %v2199_v45 = vpop.permute.xlu1 %264  ;;  %v251_v52 = vpop.permute.xlu0 %250  ;;  %v969_v37 = vrot.slane %v965_v21, 2  ;;  %v235_v48 = vadd.f32 %v233_v31, %v219_v53 }
  0xd6   : > { %v255_v49 = vadd.f32 %v251_v52, %v229_v32 }
  0xd7   : > { %906 = vrot.lane.b32.xlu1 %v902_v27, %s1762_s21  ;;  %904 = vrot.lane.b32.xlu0 %v903_v42, %s1762_s21  ;;  %v937_v27 = vsel %vm474_vm1, %v935_v8, %v936_v7  ;;  %v954_v42 = vsel %vm474_vm1, %v952_v20, %v953_v19  ;;  %v269_v53 = vadd.f32 %v2199_v45, %v235_v48 }
  0xd9   : > { %v279_v3 = vpop.permute.xlu1 %278  ;;  %v277_v12 = vpop.permute.xlu0 %276 }
  0xda   : > { %v283_v58 = vadd.f32 %v279_v3, %v241_v35 }
  0xdb   : > { %923 = vrot.lane.b32.xlu1 %v919_v46, %s1762_s21  ;;  %921 = vrot.lane.b32.xlu0 %v920_v4, %s1762_s21  ;;  %v268_v46 = vadd.f32 %v2182_v30, %v234_v13  ;;  %v282_v30 = vadd.f32 %v277_v12, %v240_v0  ;;  %v2246_v13 = vld [vmem:[%s1913_s29 + $0x28] sm:$0xff]  ;;  %s2265_s29 = sld [smem:[#allocation2 + $0x14]]  ;;  %v1048_v0 = vmul.f32 %v2255_v17, %v1047_v18 }
  0xdd   : > { %v293_v25 = vpop.permute.xlu1 %292  ;;  %v291_v34 = vpop.permute.xlu0 %290 }
  0xde   : > { %v296_v41 = vadd.f32 %v291_v34, %v254_v22  ;;  %v297_v59 = vadd.f32 %v293_v25, %v255_v49  ;;  %v1033_v22 = vstv %s2236_s10  ;;  %s2392_s10 = sld [smem:[#allocation2 + $0x50]] }
  0xdf   : > { %940 = vrot.lane.b32.xlu1 %v936_v7, %s1762_s21  ;;  %938 = vrot.lane.b32.xlu0 %v937_v27, %s1762_s21  ;;  %v987_v7 = vrot.slane %v983_v39, 2  ;;  %v1035_v29 = vmul.f32 %v2246_v13, %v1033_v22  ;;  %v1034_v31 = vmul.f32 %v2255_v17, %v1033_v22  ;;  %v1075_v39 = vstv %s2272_s12  ;;  %s1544_s12 = sld [smem:[#allocation2 + $0x2a]] }
  0xe0   : > { %v338_v38 = vadd.f32 %v2029_v23, %v296_v41  ;;  %v971_v23 = vsel %vm474_vm1, %v969_v37, %v970_v1  ;;  %v339_v12 = vadd.f32 %v334_v14, %v297_v59  ;;  %v1021_v14 = vmul.f32 %v2246_v13, %v1019_v15 }
  0xe1   : > { %v307_v47 = vpop.permute.xlu1 %306  ;;  %v305_v54 = vpop.permute.xlu0 %304  ;;  %v988_v16 = vsel %vm474_vm1, %v986_v62, %v987_v7  ;;  %v1049_v41 = vmul.f32 %v2246_v13, %v1047_v18 }
  0xe2   : > { %v310_v57 = vadd.f32 %v305_v54, %v268_v46  ;;  %v311_v11 = vadd.f32 %v307_v47, %v269_v53 }
  0xe3   : > { %957 = vrot.lane.b32.xlu1 %v953_v19, %s1763_s8  ;;  %955 = vrot.lane.b32.xlu0 %v954_v42, %s1763_s8  ;;  %v1061_v42 = vstv %s2265_s29  ;;  %s2404_s29 = sld [smem:[#allocation2 + $0x42]] }
  0xe4   : > { %v351_v52 = vadd.f32 %v2046_v33, %v310_v57  ;;  %v352_v28 = vadd.f32 %v347_v24, %v311_v11  ;;  %v1142_v57 = vstv %s2274_s18  ;;  %v1091_v11 = vmul.f32 %v2246_v13, %v1089_v44  ;;  %s1545_s18 = sld [smem:[#allocation2 + $0x45]] }
  0xe5   : > { %v321_v4 = vpop.permute.xlu1 %320  ;;  %v319_v3 = vpop.permute.xlu0 %318  ;;  %v1283_v44 = vstv %s2337_s5  ;;  %s2512_s5 = sld [smem:[#allocation2 + $0x4e]] }
  0xe6   : > { %v325_v8 = vadd.f32 %v321_v4, %v283_v58  ;;  %v324_v9 = vadd.f32 %v319_v3, %v282_v30  ;;  %v1077_v30 = vmul.f32 %v2246_v13, %v1075_v39  ;;  %v1076_v4 = vmul.f32 %v2255_v17, %v1075_v39 }
  0xe7   : > { %974 = vrot.lane.b32.xlu1 %v970_v1, %s1763_s8  ;;  %972 = vrot.lane.b32.xlu0 %v971_v23, %s1763_s8  ;;  %v1063_v1 = vmul.f32 %v2246_v13, %v1061_v42  ;;  %v1159_v3 = vstv %s2283_s23  ;;  %s1564_s23 = sld [smem:[#allocation2 + $0x30]] }
  0xe8   : > { %v365_v33 = vadd.f32 %v360_v36, %v325_v8  ;;  %v364_v19 = vadd.f32 %v2057_v40, %v324_v9  ;;  %v1020_v36 = vmul.f32 %v2255_v17, %v1019_v15 }
  0xe9   : > { %v378_v45 = vpop.permute.xlu1 %377  ;;  %v376_v21 = vpop.permute.xlu0 %375 }
  0xea   : > { %v382_v20 = vadd.f32 %v378_v45, %v339_v12  ;;  %v381_v10 = vadd.f32 %v376_v21, %v338_v38  ;;  %v1062_v38 = vmul.f32 %v2255_v17, %v1061_v42  ;;  %v1176_v12 = vstv %s2292_s26  ;;  %s1555_s26 = sld [smem:[#allocation2 + $0x2d]] }
  0xeb   : > { %991 = vrot.lane.b32.xlu1 %v987_v7, %s1763_s8  ;;  %989 = vrot.lane.b32.xlu0 %v988_v16, %s1763_s8  ;;  %v1160_v16 = vmul.f32 %v2255_v17, %v1159_v3  ;;  %v1177_v60 = vmul.f32 %v2255_v17, %v1176_v12 }
  0xed   : > { %v395_v25 = vpop.permute.xlu1 %394  ;;  %v393_v27 = vpop.permute.xlu0 %392 }
  0xee   : > { %v399_v40 = vadd.f32 %v395_v25, %v352_v28  ;;  %v398_v26 = vadd.f32 %v393_v27, %v351_v52  ;;  %v1143_v52 = vmul.f32 %v2255_v17, %v1142_v57 }
  0xef   : > { %1026 = vrot.lane.b32.xlu1 %v1021_v14, %s1762_s21  ;;  %1024 = vrot.lane.b32.xlu0 %v1020_v36, %s1762_s21  ;;  %v1164_v36 = vrot.slane %v1160_v16, 1 }
  0xf1   : > { %v412_v24 = vpop.permute.xlu1 %411  ;;  %v410_v34 = vpop.permute.xlu0 %409 }
  0xf2   : > { %v416_v32 = vadd.f32 %v412_v24, %v365_v33  ;;  %v415_v35 = vadd.f32 %v410_v34, %v364_v19  ;;  %v1147_v33 = vrot.slane %v1143_v52, 1  ;;  %v1161_v19 = vmul.f32 %v2246_v13, %v1159_v3 }
  0xf3   : > { %1040 = vrot.lane.b32.xlu1 %v1035_v29, %s1762_s21  ;;  %1038 = vrot.lane.b32.xlu0 %v1034_v31, %s1762_s21  ;;  %v1181_v29 = vrot.slane %v1177_v60, 1  ;;  %v1210_v34 = vstv %s2319_s22  ;;  %v1285_v3 = vmul.f32 %v2246_v13, %v1283_v44  ;;  %v1317_v60 = vstv %s2356_s25  ;;  %s2480_s22 = sld [smem:[#allocation2 + $0x4b]] }
  0xf4   : > { %v1165_v28 = vrot.slane %v1161_v19, 1  ;;  %v626_v19 = vstv %s2350_s15 }
  0xf5   : > { %v429_v37 = vpop.permute.xlu1 %428  ;;  %v427_v46 = vpop.permute.xlu0 %426 }
  0xf6   : > { %v433_v43 = vadd.f32 %v429_v37, %v382_v20  ;;  %v432_v47 = vadd.f32 %v427_v46, %v381_v10  ;;  %v1166_v18 = vsel %vm332_vm0, %v1164_v36, %v1165_v28  ;;  %v1211_v37 = vmul.f32 %v2255_v17, %v1210_v34 }
  0xf7   : > { %1054 = vrot.lane.b32.xlu1 %v1049_v41, %s1762_s21  ;;  %1052 = vrot.lane.b32.xlu0 %v1048_v0, %s1762_s21 }
  0xf8   : > { %v481_v48 = vadd.f32 %v476_v50, %v433_v43  ;;  %v480_v54 = vadd.f32 %v2080_v55, %v432_v47  ;;  %v1144_v55 = vmul.f32 %v2246_v13, %v1142_v57 }
  0xf9   : > { %v446_v49 = vpop.permute.xlu1 %445  ;;  %v444_v59 = vpop.permute.xlu0 %443 }
  0xfa   : > { %v450_v58 = vadd.f32 %v446_v49, %v399_v40  ;;  %v449_v62 = vadd.f32 %v444_v59, %v398_v26  ;;  %v1193_v40 = vstv %s2307_s24  ;;  %s2476_s24 = sld [smem:[#allocation2 + $0x48]] }
  0xfb   : > { %1068 = vrot.lane.b32.xlu1 %v1063_v1, %s1763_s8  ;;  %1066 = vrot.lane.b32.xlu0 %v1062_v38, %s1763_s8  ;;  %v1194_v24 = vmul.f32 %v2255_v17, %v1193_v40  ;;  %v1212_v1 = vmul.f32 %v2246_v13, %v1210_v34  ;;  %v1227_v38 = vstv %s2326_s30  ;;  %s2486_s30 = sld [smem:[#allocation2 + $0x18]] }
  0xfc   : > { %v494_v50 = vadd.f32 %v489_v56, %v450_v58  ;;  %v493_v7 = vadd.f32 %v2091_v61, %v449_v62  ;;  %v1148_v56 = vrot.slane %v1144_v55, 1  ;;  %v1228_v57 = vmul.f32 %v2255_v17, %v1227_v38 }
  0xfd   : > { %v463_v23 = vpop.permute.xlu1 %462  ;;  %v461_v8 = vpop.permute.xlu0 %460  ;;  %v1198_v47 = vrot.slane %v1194_v24, 1  ;;  %v1229_v58 = vmul.f32 %v2246_v13, %v1227_v38  ;;  %v1334_v24 = vstv %s2365_s7 }
  0xfe   : > { %v467_v53 = vadd.f32 %v463_v23, %v416_v32  ;;  %v466_v9 = vadd.f32 %v461_v8, %v415_v35  ;;  %v1195_v32 = vmul.f32 %v2246_v13, %v1193_v40  ;;  %v620_v8 = vstv %s2343_s27  ;;  %s1590_s27 = smul.u32 48, %s2604_s16 }
  0xff   : > { %1082 = vrot.lane.b32.xlu1 %v1077_v30, %s1763_s8  ;;  %1080 = vrot.lane.b32.xlu0 %v1076_v4, %s1763_s8  ;;  %v1216_v30 = vrot.slane %v1212_v1, 1  ;;  %v1215_v4 = vrot.slane %v1211_v37, 1  ;;  %v1233_v52 = vrot.slane %v1229_v58, 1  ;;  %v621_v16 = vmul.f32 %v2102_v5, %v620_v8 }
 0x100   : > { %v507_v61 = vadd.f32 %v502_v63, %v467_v53  ;;  %v506_v45 = vadd.f32 %v2107_v6, %v466_v9  ;;  %v1178_v63 = vmul.f32 %v2246_v13, %v1176_v12  ;;  %v1149_v6 = vsel %vm332_vm0, %v1147_v33, %v1148_v56  ;;  %s215_s15 = scalar_lea.vmem %s2587_s3, %s1590_s27 }
 0x101   : > { %v520_v15 = vpop.permute.xlu1 %519  ;;  %v518_v21 = vpop.permute.xlu0 %517  ;;  %v1199_v46 = vrot.slane %v1195_v32, 1  ;;  %v1232_v53 = vrot.slane %v1228_v57, 1  ;;  %v1336_v1 = vmul.f32 %v2246_v13, %v1334_v24  ;;  %v1335_v38 = vmul.f32 %v2255_v17, %v1334_v24 }
 0x102   : > { %v524_v20 = vadd.f32 %v520_v15, %v481_v48  ;;  %v523_v10 = vadd.f32 %v518_v21, %v480_v54  ;;  %v1182_v26 = vrot.slane %v1178_v63, 1  ;;  %v614_v54 = vstv %s2331_s4  ;;  %s2493_s4 = sld [smem:[#allocation2 + $0x33]] }
 0x103   : > { %1096 = vrot.lane.b32.xlu1 %v1091_v11, %s1763_s8  ;;  %1094 = vrot.lane.b32.xlu0 %v1090_v51, %s1763_s8  ;;  %v1200_v62 = vsel %vm332_vm0, %v1198_v47, %v1199_v46  ;;  %v1217_v11 = vsel %vm332_vm0, %v1215_v4, %v1216_v30  ;;  %v615_v51 = vmul.f32 %v2102_v5, %v614_v54  ;;  %v1300_v15 = vstv %s2347_s6 }
 0x104   : > { %v1183_v42 = vsel %vm332_vm0, %v1181_v29, %v1182_v26  ;;  %v1234_v21 = vsel %vm332_vm0, %v1232_v53, %v1233_v52  ;;  %v1301_v36 = vmul.f32 %v2255_v17, %v1300_v15  ;;  %v1351_v57 = vstv %s2380_s9 }
 0x105   : > { %v537_v14 = vpop.permute.xlu1 %536  ;;  %v535_v25 = vpop.permute.xlu0 %534  ;;  %v1340_v4 = vrot.slane %v1336_v1, 2 }
 0x106   : > { %v541_v22 = vadd.f32 %v537_v14, %v494_v50  ;;  %v540_v27 = vadd.f32 %v535_v25, %v493_v7  ;;  %v616_v7 = vmul.f32 %v2097_v2, %v614_v54 }
 0x107   : > { %1152 = vrot.lane.b32.xlu1 %v1148_v56, %s1762_s21  ;;  %1150 = vrot.lane.b32.xlu0 %v1149_v6, %s1762_s21  ;;  %v1284_v56 = vmul.f32 %v2255_v17, %v1283_v44  ;;  %v1339_v44 = vrot.slane %v1335_v38, 2 }
 0x109   : > { %v554_v31 = vpop.permute.xlu1 %553  ;;  %v552_v41 = vpop.permute.xlu0 %551  ;;  %v1288_v6 = vrot.slane %v1284_v56, 2  ;;  %v1341_v56 = vsel %vm474_vm1, %v1339_v44, %v1340_v4 }
 0x10a   : > { %v558_v35 = vadd.f32 %v554_v31, %v507_v61  ;;  %v557_v0 = vadd.f32 %v552_v41, %v506_v45  ;;  %v622_v45 = vmul.f32 %v2097_v2, %v620_v8  ;;  %v1319_v31 = vmul.f32 %v2246_v13, %v1317_v60 }
 0x10b   : > { %1169 = vrot.lane.b32.xlu1 %v1165_v28, %s1762_s21  ;;  %1167 = vrot.lane.b32.xlu0 %v1166_v18, %s1762_s21  ;;  %v1302_v28 = vmul.f32 %v2246_v13, %v1300_v15  ;;  %v1318_v18 = vmul.f32 %v2255_v17, %v1317_v60 }
 0x10c   : > { %v1323_v47 = vrot.slane %v1319_v31, 2 }
 0x10d   : > { %v571_v43 = vpop.permute.xlu1 %570  ;;  %v569_v48 = vpop.permute.xlu0 %568  ;;  %v1306_v41 = vrot.slane %v1302_v28, 2  ;;  %v1322_v54 = vrot.slane %v1318_v18, 2 }
 0x10e   : > { %v575_v39 = vadd.f32 %v571_v43, %v524_v20  ;;  %v574_v49 = vadd.f32 %v569_v48, %v523_v10  ;;  %v1289_v10 = vrot.slane %v1285_v3, 2 }
 0x10f   : > { %1186 = vrot.lane.b32.xlu1 %v1182_v26, %s1762_s21  ;;  %1184 = vrot.lane.b32.xlu0 %v1183_v42, %s1762_s21  ;;  %v627_v26 = vmul.f32 %v2102_v5, %v626_v19 }
 0x110   : > { %v618_v20 = vadd.f32 %v616_v7, %v575_v39  ;;  %v617_v14 = vadd.f32 %v615_v51, %v574_v49  ;;  %v1324_v7 = vsel %vm474_vm1, %v1322_v54, %v1323_v47 }
 0x111   : > { %v588_v59 = vpop.permute.xlu1 %587  ;;  %v586_v55 = vpop.permute.xlu0 %585 }
 0x112   : > { %v592_v50 = vadd.f32 %v588_v59, %v541_v22  ;;  %v591_v23 = vadd.f32 %v586_v55, %v540_v27  ;;  %v628_v27 = vmul.f32 %v2097_v2, %v626_v19  ;;  %v1352_v55 = vmul.f32 %v2255_v17, %v1351_v57 }
 0x113   : > { %1203 = vrot.lane.b32.xlu1 %v1199_v46, %s1763_s8  ;;  %1201 = vrot.lane.b32.xlu0 %v1200_v62, %s1763_s8 }
 0x114   : > { %v624_v29 = vadd.f32 %v622_v45, %v592_v50  ;;  %v623_v34 = vadd.f32 %v621_v16, %v591_v23  ;;  %v1353_v50 = vmul.f32 %v2246_v13, %v1351_v57 }
 0x115   : > { %v605_v9 = vpop.permute.xlu1 %604  ;;  %v603_v12 = vpop.permute.xlu0 %602 }
 0x116   : > { %v609_v61 = vadd.f32 %v605_v9, %v558_v35  ;;  %v608_v33 = vadd.f32 %v603_v12, %v557_v0  ;;  %v1290_v35 = vsel %vm474_vm1, %v1288_v6, %v1289_v10  ;;  %v1305_v0 = vrot.slane %v1301_v36, 2 }
 0x117   : > { %1220 = vrot.lane.b32.xlu1 %v1216_v30, %s1763_s8  ;;  %1218 = vrot.lane.b32.xlu0 %v1217_v11, %s1763_s8  ;;  %v716_v30 = vstv %s2385_s28  ;;  %v729_v11 = vstv %s2394_s11  ;;  %v1356_v12 = vrot.slane %v1352_v55, 2 }
 0x118   : > { %v630_v46 = vadd.f32 %v628_v27, %v609_v61  ;;  %v629_v48 = vadd.f32 %v627_v26, %v608_v33  ;;  %v1307_v49 = vsel %vm474_vm1, %v1305_v0, %v1306_v41  ;;  %v717_v3 = vmul.f32 %v2102_v5, %v716_v30 }
 0x119   : > { %v640_v63 = vpop.permute.xlu1 %639  ;;  %v638_v25 = vpop.permute.xlu0 %637  ;;  %v718_v9 = vmul.f32 %v2097_v2, %v716_v30  ;;  %v1357_v61 = vrot.slane %v1353_v50, 2  ;;  %v730_v16 = vmul.f32 %v2102_v5, %v729_v11  ;;  %v731_v19 = vmul.f32 %v2097_v2, %v729_v11 }
 0x11a   : > { %v644_v22 = vadd.f32 %v640_v63, %v618_v20  ;;  %v643_v40 = vadd.f32 %v638_v25, %v617_v14  ;;  %v742_v14 = vstv %s2404_s29 }
 0x11b   : > { %1237 = vrot.lane.b32.xlu1 %v1233_v52, %s1763_s8  ;;  %1235 = vrot.lane.b32.xlu0 %v1234_v21, %s1763_s8  ;;  %v1368_v52 = vstv %s2392_s10  ;;  %v722_v60 = vrot.slane %v718_v9, 1  ;;  %v1358_v6 = vsel %vm474_vm1, %v1356_v12, %v1357_v61  ;;  %v734_v25 = vrot.slane %v730_v16, 1 }
 0x11c   : > { %v1370_v33 = vmul.f32 %v2246_v13, %v1368_v52  ;;  %v1369_v45 = vmul.f32 %v2255_v17, %v1368_v52  ;;  %v743_v31 = vmul.f32 %v2102_v5, %v742_v14  ;;  %v744_v18 = vmul.f32 %v2097_v2, %v742_v14 }
 0x11d   : > { %v654_v32 = vpop.permute.xlu1 %653  ;;  %v652_v37 = vpop.permute.xlu0 %651 }
 0x11e   : > { %v658_v42 = vadd.f32 %v654_v32, %v624_v29  ;;  %v657_v43 = vadd.f32 %v652_v37, %v623_v34  ;;  %v1374_v36 = vrot.slane %v1370_v33, 2 }
 0x11f   : > { %1293 = vrot.lane.b32.xlu1 %v1289_v10, %s1762_s21  ;;  %1291 = vrot.lane.b32.xlu0 %v1290_v35, %s1762_s21  ;;  %v721_v10 = vrot.slane %v717_v3, 1 }
 0x121   : > { %v668_v39 = vpop.permute.xlu1 %667  ;;  %v666_v59 = vpop.permute.xlu0 %665  ;;  %v723_v29 = vsel %vm332_vm0, %v721_v10, %v722_v60 }
 0x122   : > { %v672_v58 = vadd.f32 %v668_v39, %v630_v46  ;;  %v671_v62 = vadd.f32 %v666_v59, %v629_v48  ;;  %v748_v46 = vrot.slane %v744_v18, 1 }
 0x123   : > { %1310 = vrot.lane.b32.xlu1 %v1306_v41, %s1762_s21  ;;  %1308 = vrot.lane.b32.xlu0 %v1307_v49, %s1762_s21 }
 0x125   : > { %v682_v23 = vpop.permute.xlu1 %681  ;;  %v680_v8 = vpop.permute.xlu0 %679 }
 0x126   : > { %v686_v53 = vadd.f32 %v682_v23, %v644_v22  ;;  %v685_v51 = vadd.f32 %v680_v8, %v643_v40  ;;  %v1373_v22 = vrot.slane %v1369_v45, 2  ;;  %v735_v40 = vrot.slane %v731_v19, 1 }
 0x127   : > { %1327 = vrot.lane.b32.xlu1 %v1323_v47, %s1762_s21  ;;  %1325 = vrot.lane.b32.xlu0 %v1324_v7, %s1762_s21  ;;  %s1543_s21 = sld [smem:[#allocation2 + $0xf]]  ;;  %v870_v8 = vstv %s1544_s12  ;;  %v883_v45 = vstv %s1545_s18 }
 0x128   : > { %v727_v32 = vadd.f32 %v722_v60, %v686_v53  ;;  %v726_v35 = vadd.f32 %v723_v29, %v685_v51  ;;  %v1375_v41 = vsel %vm474_vm1, %v1373_v22, %v1374_v36  ;;  %v736_v37 = vsel %vm332_vm0, %v734_v25, %v735_v40 }
 0x129   : > { %v696_v15 = vpop.permute.xlu1 %695  ;;  %v694_v21 = vpop.permute.xlu0 %693  ;;  %v885_v14 = vmul.f32 %v2097_v2, %v883_v45 }
 0x12a   : > { %v700_v20 = vadd.f32 %v696_v15, %v658_v42  ;;  %v699_v63 = vadd.f32 %v694_v21, %v657_v43  ;;  %v747_v43 = vrot.slane %v743_v31, 1  ;;  %v872_v15 = vmul.f32 %v2097_v2, %v870_v8 }
 0x12b   : > { %1344 = vrot.lane.b32.xlu1 %v1340_v4, %s1763_s8  ;;  %1342 = vrot.lane.b32.xlu0 %v1341_v56, %s1763_s8  ;;  %v871_v56 = vmul.f32 %v2102_v5, %v870_v8  ;;  %v889_v29 = vrot.slane %v885_v14, 2 }
 0x12c   : > { %v740_v1 = vadd.f32 %v735_v40, %v700_v20  ;;  %v739_v39 = vadd.f32 %v736_v37, %v699_v63  ;;  %v749_v54 = vsel %vm332_vm0, %v747_v43, %v748_v46  ;;  %v876_v60 = vrot.slane %v872_v15, 2 }
 0x12d   : > { %v710_v28 = vpop.permute.xlu1 %709  ;;  %v708_v26 = vpop.permute.xlu0 %707  ;;  %v857_v44 = vstv %s1543_s21  ;;  %v875_v20 = vrot.slane %v871_v56, 2  ;;  %v884_v63 = vmul.f32 %v2102_v5, %v883_v45  ;;  %v1103_v56 = vstv %s1563_s19 }
 0x12e   : > { %v714_v27 = vadd.f32 %v710_v28, %v672_v58  ;;  %v713_v24 = vadd.f32 %v708_v26, %v671_v62  ;;  %v858_v23 = vmul.f32 %v2102_v5, %v857_v44  ;;  %v859_v7 = vmul.f32 %v2097_v2, %v857_v44 }
 0x12f   : > { %1361 = vrot.lane.b32.xlu1 %v1357_v61, %s1763_s8  ;;  %1359 = vrot.lane.b32.xlu0 %v1358_v6, %s1763_s8  ;;  %v888_v26 = vrot.slane %v884_v63, 2  ;;  %v1007_v45 = vstv %s1555_s26 }
 0x130   : > { %v753_v58 = vadd.f32 %v748_v46, %v714_v27  ;;  %v752_v62 = vadd.f32 %v749_v54, %v713_v24  ;;  %v862_v11 = vrot.slane %v858_v23, 2  ;;  %v863_v51 = vrot.slane %v859_v7, 2 }
 0x131   : > { %v766_v34 = vpop.permute.xlu1 %765  ;;  %v764_v42 = vpop.permute.xlu0 %763  ;;  %v877_v27 = vsel %vm474_vm1, %v875_v20, %v876_v60  ;;  %v890_v5 = vsel %vm474_vm1, %v888_v26, %v889_v29 }
 0x132   : > { %v770_v0 = vadd.f32 %v766_v34, %v727_v32  ;;  %v769_v47 = vadd.f32 %v764_v42, %v726_v35  ;;  %v864_v19 = vsel %vm474_vm1, %v862_v11, %v863_v51 }
 0x133   : > { %1378 = vrot.lane.b32.xlu1 %v1374_v36, %s1763_s8  ;;  %1376 = vrot.lane.b32.xlu0 %v1375_v41, %s1763_s8  ;;  %s1554_s8 = sld [smem:[#allocation2 + $0x12]] }
 0x135   : > { %v783_v38 = vpop.permute.xlu1 %782  ;;  %v781_v49 = vpop.permute.xlu0 %780 }
 0x136   : > { %v787_v48 = vadd.f32 %v783_v38, %v740_v1  ;;  %v786_v57 = vadd.f32 %v781_v49, %v739_v39 }
 0x139   : > { %v800_v59 = vpop.permute.xlu1 %799  ;;  %v798_v4 = vpop.permute.xlu0 %797 }
 0x13a   : > { %v804_v30 = vadd.f32 %v800_v59, %v753_v58  ;;  %v803_v50 = vadd.f32 %v798_v4, %v752_v62 }
 0x13d   : > { %v817_v55 = vpop.permute.xlu1 %816  ;;  %v815_v53 = vpop.permute.xlu0 %814 }
 0x13e   : > { %v821_v52 = vadd.f32 %v817_v55, %v770_v0  ;;  %v820_v3 = vadd.f32 %v815_v53, %v769_v47 }
 0x140   : > { %v868_v28 = vadd.f32 %v863_v51, %v821_v52  ;;  %v867_v22 = vadd.f32 %v864_v19, %v820_v3  ;;  %v1001_v51 = vstv %s1554_s8 }
 0x141   : > { %v834_v9 = vpop.permute.xlu1 %833  ;;  %v832_v12 = vpop.permute.xlu0 %831  ;;  %v1002_v20 = vmul.f32 %v2255_v17, %v1001_v51 }
 0x142   : > { %v838_v61 = vadd.f32 %v834_v9, %v787_v48  ;;  %v837_v33 = vadd.f32 %v832_v12, %v786_v57 }
 0x144   : > { %v881_v18 = vadd.f32 %v876_v60, %v838_v61  ;;  %v880_v32 = vadd.f32 %v877_v27, %v837_v33  ;;  %v1116_v61 = vstv %s1564_s23  ;;  %v1003_v33 = vmul.f32 %v2246_v13, %v1001_v51 }
 0x145   : > { %v851_v16 = vpop.permute.xlu1 %850  ;;  %v849_v10 = vpop.permute.xlu0 %848  ;;  %v1105_v60 = vmul.f32 %v2246_v13, %v1103_v56  ;;  %v1117_v63 = vmul.f32 %v2255_v17, %v1116_v61  ;;  %v1118_v14 = vmul.f32 %v2246_v13, %v1116_v61 }
 0x146   : > { %v855_v21 = vadd.f32 %v851_v16, %v804_v30  ;;  %v854_v6 = vadd.f32 %v849_v10, %v803_v50  ;;  %v1013_v10 = vstv %s2476_s24 }
 0x148   : > { %v894_v2 = vadd.f32 %v889_v29, %v855_v21  ;;  %v893_v42 = vadd.f32 %v890_v5, %v854_v6  ;;  %v1104_v21 = vmul.f32 %v2255_v17, %v1103_v56  ;;  %v1009_v6 = vmul.f32 %v2246_v13, %v1007_v45 }
 0x149   : > { %v907_v36 = vpop.permute.xlu1 %906  ;;  %v905_v40 = vpop.permute.xlu0 %904  ;;  %v1122_v5 = vrot.slane %v1118_v14, 1  ;;  %v1257_v56 = vstv %s2493_s4 }
 0x14a   : > { %v911_v25 = vadd.f32 %v907_v36, %v868_v28  ;;  %v910_v31 = vadd.f32 %v905_v40, %v867_v22  ;;  %v1129_v40 = vstv %s2480_s22 }
 0x14d   : > { %v924_v24 = vpop.permute.xlu1 %923  ;;  %v922_v35 = vpop.permute.xlu0 %921 }
 0x14e   : > { %v928_v34 = vadd.f32 %v924_v24, %v881_v18  ;;  %v927_v41 = vadd.f32 %v922_v35, %v880_v32  ;;  %v1108_v18 = vrot.slane %v1104_v21, 1  ;;  %v1109_v32 = vrot.slane %v1105_v60, 1 }
 0x14f   : > { %v1121_v35 = vrot.slane %v1117_v63, 1  ;;  %v1258_v21 = vmul.f32 %v2255_v17, %v1257_v56  ;;  %v1259_v63 = vmul.f32 %v2246_v13, %v1257_v56 }
 0x151   : > { %v941_v0 = vpop.permute.xlu1 %940  ;;  %v939_v43 = vpop.permute.xlu0 %938 }
 0x152   : > { %v2444_v37 = vadd.f32 %v941_v0, %v894_v2  ;;  %v2446_v46 = vadd.f32 %v939_v43, %v893_v42  ;;  %v1131_v0 = vmul.f32 %v2246_v13, %v1129_v40  ;;  %v1244_v43 = vstv %s2486_s30 }
 0x155   : > { %v958_v47 = vpop.permute.xlu1 %957  ;;  %v956_v1 = vpop.permute.xlu0 %955 }
 0x156   : > { %v962_v15 = vadd.f32 %v958_v47, %v911_v25  ;;  %v961_v19 = vadd.f32 %v956_v1, %v910_v31  ;;  %v1008_v25 = vmul.f32 %v2255_v17, %v1007_v45  ;;  %v1015_v31 = vmul.f32 %v2246_v13, %v1013_v10 }
 0x157   : > { %v1014_v1 = vmul.f32 %v2255_v17, %v1013_v10 }
 0x158   : > { %v1005_v22 = vadd.f32 %v1003_v33, %v962_v15  ;;  %v1004_v29 = vadd.f32 %v1002_v20, %v961_v19  ;;  %v1110_v15 = vsel %vm332_vm0, %v1108_v18, %v1109_v32  ;;  %v1245_v33 = vmul.f32 %v2255_v17, %v1244_v43 }
 0x159   : > { %v975_v38 = vpop.permute.xlu1 %974  ;;  %v973_v39 = vpop.permute.xlu0 %972  ;;  %v1135_v19 = vrot.slane %v1131_v0, 1 }
 0x15a   : > { %v979_v36 = vadd.f32 %v975_v38, %v928_v34  ;;  %v978_v26 = vadd.f32 %v973_v39, %v927_v41  ;;  %v1130_v34 = vmul.f32 %v2255_v17, %v1129_v40 }
 0x15c   : > { %v1011_v47 = vadd.f32 %v1009_v6, %v979_v36  ;;  %v1134_v45 = vrot.slane %v1130_v34, 1  ;;  %v1249_v36 = vrot.slane %v1245_v33, 2 }
 0x15d   : > { %v2448_v48 = vpop.permute.xlu1 %991  ;;  %v2450_v49 = vpop.permute.xlu0 %989 }
 0x15e   : > { %v996_v41 = vadd.f32 %v2448_v48, %v2444_v37  ;;  %v1246_v37 = vmul.f32 %v2246_v13, %v1244_v43  ;;  %v1136_v40 = vsel %vm332_vm0, %v1134_v45, %v1135_v19 }
 0x161   : > { %v1027_v54 = vpop.permute.xlu1 %1026  ;;  %v1025_v57 = vpop.permute.xlu0 %1024 }
 0x162   : > { %v1031_v24 = vadd.f32 %v1027_v54, %v1005_v22  ;;  %v1030_v2 = vadd.f32 %v1025_v57, %v1004_v29  ;;  %v995_v54 = vadd.f32 %v2450_v49, %v2446_v46  ;;  %v1010_v57 = vadd.f32 %v1008_v25, %v978_v26 }
 0x163   : > { %v1017_v46 = vadd.f32 %v1015_v31, %v996_v41  ;;  %v1250_v22 = vrot.slane %v1246_v37, 2  ;;  %v1270_v29 = vstv %s2512_s5 }
 0x164   : > { %v1016_v10 = vadd.f32 %v1014_v1, %v995_v54  ;;  %v1271_v34 = vmul.f32 %v2255_v17, %v1270_v29  ;;  %v1272_v0 = vmul.f32 %v2246_v13, %v1270_v29 }
 0x165   : > { %v2452_v58 = vpop.permute.xlu1 %1040  ;;  %v2454_v59 = vpop.permute.xlu0 %1038 }
 0x166   : > { %v1045_v61 = vadd.f32 %v2452_v58, %v1011_v47  ;;  %v1044_v48 = vadd.f32 %v2454_v59, %v1010_v57  ;;  %v1275_v54 = vrot.slane %v1271_v34, 2  ;;  %v1276_v13 = vrot.slane %v1272_v0, 2 }
 0x169   : > { %v2456_v62 = vpop.permute.xlu1 %1054  ;;  %v2458_v30 = vpop.permute.xlu0 %1052 }
 0x16a   : > { %v1059_v14 = vadd.f32 %v2456_v62, %v1017_v46 }
 0x16d   : > { %v1069_v4 = vpop.permute.xlu1 %1068  ;;  %v1067_v44 = vpop.permute.xlu0 %1066 }
 0x16e   : > { %v1073_v38 = vadd.f32 %v1069_v4, %v1031_v24  ;;  %v1072_v51 = vadd.f32 %v1067_v44, %v1030_v2  ;;  %v1123_v4 = vsel %vm332_vm0, %v1121_v35, %v1122_v5  ;;  %v1251_v2 = vsel %vm474_vm1, %v1249_v36, %v1250_v22 }
 0x170   : > { %v1114_v44 = vadd.f32 %v1109_v32, %v1073_v38  ;;  %v1113_v59 = vadd.f32 %v1110_v15, %v1072_v51  ;;  %v1263_v32 = vrot.slane %v1259_v63, 2 }
 0x171   : > { %v2460_v50 = vpop.permute.xlu1 %1082  ;;  %v2462_v55 = vpop.permute.xlu0 %1080 }
 0x172   : > { %v1087_v49 = vadd.f32 %v2460_v50, %v1045_v61  ;;  %v1086_v60 = vadd.f32 %v2462_v55, %v1044_v48  ;;  %v1058_v50 = vadd.f32 %v2458_v30, %v1016_v10 }
 0x174   : > { %v1127_v31 = vadd.f32 %v1122_v5, %v1087_v49  ;;  %v1126_v30 = vadd.f32 %v1123_v4, %v1086_v60 }
 0x175   : > { %v2464_v23 = vpop.permute.xlu1 %1096  ;;  %v2466_v7 = vpop.permute.xlu0 %1094 }
 0x176   : > { %v1101_v55 = vadd.f32 %v2464_v23, %v1059_v14  ;;  %v1100_v24 = vadd.f32 %v2466_v7, %v1058_v50 }
 0x178   : > { %v1139_v47 = vadd.f32 %v1136_v40, %v1100_v24 }
 0x179   : > { %v2468_v52 = vpop.permute.xlu1 %1152  ;;  %v2470_v53 = vpop.permute.xlu0 %1150 }
 0x17a   : > { %v1157_v6 = vadd.f32 %v2468_v52, %v1114_v44  ;;  %v1156_v25 = vadd.f32 %v2470_v53, %v1113_v59  ;;  %v1262_v52 = vrot.slane %v1258_v21, 2 }
 0x17d   : > { %v2472_v8 = vpop.permute.xlu1 %1169  ;;  %v2474_v3 = vpop.permute.xlu0 %1167 }
 0x17e   : > { %v1174_v35 = vadd.f32 %v2472_v8, %v1127_v31  ;;  %v1173_v23 = vadd.f32 %v2474_v3, %v1126_v30  ;;  %v1264_v8 = vsel %vm474_vm1, %v1262_v52, %v1263_v32 }
 0x181   : > { %v2478_v9 = vpop.permute.xlu1 %1186  ;;  %v2482_v11 = vpop.permute.xlu0 %1184 }
 0x182   : > { %v1190_v3 = vadd.f32 %v2482_v11, %v1139_v47  ;;  %v1277_v11 = vsel %vm474_vm1, %v1275_v54, %v1276_v13 }
 0x185   : > { %v2484_v12 = vpop.permute.xlu1 %1203  ;;  %v2489_v16 = vpop.permute.xlu0 %1201 }
 0x186   : > { %v1208_v62 = vadd.f32 %v2484_v12, %v1157_v6  ;;  %v1207_v53 = vadd.f32 %v2489_v16, %v1156_v25  ;;  %v1140_v12 = vadd.f32 %v1135_v19, %v1101_v55 }
 0x188   : > { %v1255_v7 = vadd.f32 %v1250_v22, %v1208_v62  ;;  %v1254_v1 = vadd.f32 %v1251_v2, %v1207_v53  ;;  %v1191_v38 = vadd.f32 %v2478_v9, %v1140_v12 }
 0x189   : > { %v2500_v28 = vpop.permute.xlu1 %1220  ;;  %v2504_v27 = vpop.permute.xlu0 %1218 }
 0x18a   : > { %v1225_v43 = vadd.f32 %v2500_v28, %v1174_v35  ;;  %v1224_v16 = vadd.f32 %v2504_v27, %v1173_v23 }
 0x18c   : > { %v1268_v27 = vadd.f32 %v1263_v32, %v1225_v43  ;;  %v1267_v15 = vadd.f32 %v1264_v8, %v1224_v16 }
 0x18d   : > { %v2509_v42 = vpop.permute.xlu1 %1237  ;;  %v2517_v39 = vpop.permute.xlu0 %1235 }
 0x18e   : > { %v1242_v28 = vadd.f32 %v2509_v42, %v1191_v38  ;;  %v1241_v9 = vadd.f32 %v2517_v39, %v1190_v3 }
 0x190   : > { %v1281_v45 = vadd.f32 %v1276_v13, %v1242_v28 }
 0x191   : > { %v1294_v20 = vpop.permute.xlu1 %1293  ;;  %v1292_v58 = vpop.permute.xlu0 %1291 }
 0x192   : > { %v1298_v17 = vadd.f32 %v1294_v20, %v1255_v7  ;;  %v1297_v57 = vadd.f32 %v1292_v58, %v1254_v1  ;;  %v1280_v20 = vadd.f32 %v1277_v11, %v1241_v9 }
 0x195   : > { %v1311_v26 = vpop.permute.xlu1 %1310  ;;  %v1309_v18 = vpop.permute.xlu0 %1308 }
 0x196   : > { %v1315_v37 = vadd.f32 %v1311_v26, %v1268_v27  ;;  %v1314_v48 = vadd.f32 %v1309_v18, %v1267_v15 }
 0x199   : > { %v1328_v5 = vpop.permute.xlu1 %1327  ;;  %v1326_v41 = vpop.permute.xlu0 %1325 }
 0x19a   : > { %v1332_v49 = vadd.f32 %v1328_v5, %v1281_v45  ;;  %v1331_v39 = vadd.f32 %v1326_v41, %v1280_v20 }
 0x19d   : > { %v1345_v51 = vpop.permute.xlu1 %1344  ;;  %v1343_v61 = vpop.permute.xlu0 %1342 }
 0x19e   : > { %v1349_v56 = vadd.f32 %v1345_v51, %v1298_v17  ;;  %v1348_v33 = vadd.f32 %v1343_v61, %v1297_v57 }
 0x1a0   : > { %1387 = vst.msk [vmem:[%s215_s15 + $0x8] sm:$0x3f] %vm1386_vm2, %v1349_v56 }
 0x1a1   : > { %1385 = vst.msk [vmem:[%s215_s15] sm:$0xff] %vm1384_vm3, %v1348_v33  ;;  %v1362_v4 = vpop.permute.xlu1 %1361  ;;  %v1360_v42 = vpop.permute.xlu0 %1359 }
 0x1a2   : > { %v1366_v19 = vadd.f32 %v1362_v4, %v1315_v37  ;;  %v1365_v46 = vadd.f32 %v1360_v42, %v1314_v48 }
 0x1a4   : > { %1582 = vst.msk [vmem:[%s215_s15 + $0x18] sm:$0x3f] %vm1386_vm2, %v1366_v19 }
 0x1a5   : > { %1581 = vst.msk [vmem:[%s215_s15 + $0x10] sm:$0xff] %vm1384_vm3, %v1365_v46  ;;  %v1379_v44 = vpop.permute.xlu1 %1378  ;;  %v1377_v21 = vpop.permute.xlu0 %1376 }
 0x1a6   : > { %v1383_v58 = vadd.f32 %v1379_v44, %v1332_v49  ;;  %v1382_v10 = vadd.f32 %v1377_v21, %v1331_v39 }
 0x1a8   : > { %1584 = vst.msk [vmem:[%s215_s15 + $0x28] sm:$0x3f] %vm1386_vm2, %v1383_v58 }
 0x1a9   : > { %1583 = vst.msk [vmem:[%s215_s15 + $0x20] sm:$0xff] %vm1384_vm3, %v1382_v10 }
 0x1aa PF: > { %p15_p11 = scmp.ge.s32.totalorder %s1806_s17, 4   ;;  %s2599_s12 = smov %s1747_s13 }
 0x1ab   : > { %s2600_s13 = smov %s1751_s14  ;;  %s2601_s14 = smov %s1816_s20 }
 0x1ac   : > { %s2602_s15 = smov %s1806_s17  ;;  %17 = sbr.rel (!%p15_p11) target bundleno = 5 (0x5), region = 86 }
 0x1b3   :  { %1415 = vsyncpa [#allocation3], 1 }
 0x1b4   :  { %1417 = vsyncpa [#allocation3 + $0x1], 1 }
 0x1b5   :  { %1418 = vsyncpa [#allocation4], 1 }
 0x1b6   :  { %1420 = vsyncpa [#allocation4 + $0x1], 1 }
 0x1b7   :  { %1421 = vsyncpa [#allocation5], 1 }
 0x1b8   :  { %1423 = vsyncpa [#allocation5 + $0x1], 1 }

</bundles_post_ra>
